<compile_context>
chip_gen: v6e
topology: v6e:2x2x1
jax: 0.10.0
libtpu: 0.0.40
codegen_flags: <defaults>
</compile_context>

<pallas_src>
import math
import functools

import jax
import jax.numpy as jnp
from jax.experimental import pallas as pl
from jax.experimental.pallas import tpu as pltpu


def encoder_layer_kernel(x_ref, pe_ref,
                         wq_ref, bq_ref, wk_ref, bk_ref, wv_ref, bv_ref,
                         wo_ref, bo_ref, g1_ref, be1_ref,
                         w1_ref, b1_ref, w2_ref, b2_ref, g2_ref, be2_ref,
                         out_ref, *, bt, seq, heads, d_k, eps):
    rows = bt * seq                      # batch-folded M dimension

    x2 = x_ref[...]                      # (rows, D), rows ordered (b, s)

    # ---- lane-dense QKV projections on the whole (rows, D) slab ----
    q = jnp.dot(x2, wq_ref[...], preferred_element_type=jnp.float32) + bq_ref[...]
    k = jnp.dot(x2, wk_ref[...], preferred_element_type=jnp.float32) + bk_ref[...]
    v = jnp.dot(x2, wv_ref[...], preferred_element_type=jnp.float32) + bv_ref[...]

    pe = pe_ref[...]                     # (bt, H, S, S) untied positional scores
    scale = 1.0 / math.sqrt(2.0 * d_k)

    # ---- scaled dot-product attention ----
    # Heads live in the lane dim after the fused projections, so a small static
    # loop over heads slices d_k lanes per head; the batch tile is handled by a
    # single leading batch dim in the einsum (no per-batch Python loop, no
    # batch-wise concatenate).
    o_parts = []
    for h in range(heads):
        cs = slice(h * d_k, (h + 1) * d_k)
        qh = q[:, cs].reshape(bt, seq, d_k)          # sublane-aligned row split
        kh = k[:, cs].reshape(bt, seq, d_k)
        vh = v[:, cs].reshape(bt, seq, d_k)
        s = jnp.einsum('bqd,bkd->bqk', qh, kh,
                       preferred_element_type=jnp.float32) * scale + pe[:, h]
        s = s - jnp.max(s, axis=-1, keepdims=True)
        p = jnp.exp(s)
        p = p / jnp.sum(p, axis=-1, keepdims=True)   # exact softmax (no approx recip)
        oh = jnp.einsum('bqk,bkd->bqd', p, vh,
                        preferred_element_type=jnp.float32)
        o_parts.append(oh.reshape(rows, d_k))
    o = o_parts[0] if heads == 1 else jnp.concatenate(o_parts, axis=-1)  # (rows, D)

    # ---- output projection: one lane-dense (rows, D) x (D, D) matmul ----
    attn = jnp.dot(o, wo_ref[...], preferred_element_type=jnp.float32) + bo_ref[...]

    # dropout_1 -> identity (eval mode)
    # ---- residual + LayerNorm 1 (biased variance, as in torch.nn.LayerNorm) ----
    y = attn + x2
    mu1 = jnp.mean(y, axis=-1, keepdims=True)
    yc = y - mu1
    var1 = jnp.mean(yc * yc, axis=-1, keepdims=True)
    y = yc * jax.lax.rsqrt(var1 + eps) * g1_ref[...] + be1_ref[...]

    # ---- feed forward on the full (rows, D) slab: gelu(y @ W1) @ W2 ----
    h1 = jnp.dot(y, w1_ref[...], preferred_element_type=jnp.float32) + b1_ref[...]
    h1 = 0.5 * h1 * (1.0 + jax.lax.erf(h1 * (1.0 / math.sqrt(2.0))))  # exact-erf GELU
    ff = jnp.dot(h1, w2_ref[...], preferred_element_type=jnp.float32) + b2_ref[...]

    # dropout_2 -> identity (eval mode)
    # ---- residual + LayerNorm 2 ----
    z = ff + y
    mu2 = jnp.mean(z, axis=-1, keepdims=True)
    zc = z - mu2
    var2 = jnp.mean(zc * zc, axis=-1, keepdims=True)
    out_ref[...] = zc * jax.lax.rsqrt(var2 + eps) * g2_ref[...] + be2_ref[...]


def _const_index_map(ndim):
    zeros = (0,) * ndim
    return lambda i: zeros


def transformer_encoder_layer(x, scores_pe, params, *, heads, eps,
                              rows_per_step=512):
    B, S, D = x.shape
    assert D % heads == 0, "d_model must be divisible by heads"
    d_k = D // heads
    d_ff = params["w1"].shape[1]

    # Batch tile: present as many rows (bt*S) as reasonable per grid step, but
    # keep >= 2 grid steps whenever B >= 2 so the "parallel" axis can shard
    # across v7x's two TensorCores (and megacore on v5e/v6e).
    target = max(1, rows_per_step // S)
    max_bt = min(B, target)
    if B >= 2:
        max_bt = min(max_bt, B // 2)
    max_bt = max(1, max_bt)
    bt = 1
    for cand in range(max_bt, 0, -1):
        if B % cand == 0:
            bt = cand
            break
    n_steps = B // bt
    rows = bt * S

    # --- wrapper-side layout plumbing (plain XLA ops, outside the kernel) ---
    x_flat = x.reshape(B * S, D)                      # fold batch into M

    param_list = [
        params["wq"], params["bq"], params["wk"], params["bk"],
        params["wv"], params["bv"], params["wo"], params["bo"],
        params["g1"], params["be1"],
        params["w1"], params["b1"], params["w2"], params["b2"],
        params["g2"], params["be2"],
    ]

    kernel = functools.partial(encoder_layer_kernel,
                               bt=bt, seq=S, heads=heads, d_k=d_k, eps=eps)

    in_specs = [
        pl.BlockSpec((rows, D), lambda i: (i, 0)),                # folded x
        pl.BlockSpec((bt, heads, S, S), lambda i: (i, 0, 0, 0)),  # scores_pe
    ]
    in_specs += [pl.BlockSpec(p.shape, _const_index_map(p.ndim)) for p in param_list]

    # VMEM budget: double-buffered x / pe / out blocks + grid-invariant params +
    # in-kernel intermediates (q/k/v/o/attn/y/h1/ff/z slabs, per-head scores) +
    # headroom; capped at 40 MiB so it leaves room inside v7x's 64 MiB VMEM.
    blk_bytes = 4 * (2 * rows * D + bt * heads * S * S)        # x + out + pe blocks
    par_bytes = 4 * sum(int(p.size) for p in param_list)
    inter_bytes = 4 * (rows * (6 * D + 2 * d_ff) + 2 * bt * heads * S * S)
    vmem_limit = int(min(40 << 20,
                         max(16 << 20,
                             2 * blk_bytes + par_bytes + inter_bytes + (8 << 20))))

    out = pl.pallas_call(
        kernel,
        out_shape=jax.ShapeDtypeStruct((B * S, D), jnp.float32),
        grid=(n_steps,),
        in_specs=in_specs,
        out_specs=pl.BlockSpec((rows, D), lambda i: (i, 0)),
        compiler_params=pltpu.CompilerParams(
            dimension_semantics=("parallel",),
            vmem_limit_bytes=vmem_limit),
    )(x_flat, scores_pe, *param_list)
    return out.reshape(B, S, D)


# ------------------------- pure-JAX reference -------------------------
def reference_forward(x, scores_pe, params, *, heads, eps):
    B, S, D = x.shape
    d_k = D // heads
    hp = jax.lax.Precision.HIGHEST

    def ln(v, g, b):
        m = jnp.mean(v, axis=-1, keepdims=True)
        var = jnp.mean((v - m) ** 2, axis=-1, keepdims=True)
        return (v - m) / jnp.sqrt(var + eps) * g + b

    q = jnp.dot(x, params["wq"], precision=hp) + params["bq"]
    k = jnp.dot(x, params["wk"], precision=hp) + params["bk"]
    v = jnp.dot(x, params["wv"], precision=hp) + params["bv"]
    q = q.reshape(B, S, heads, d_k).transpose(0, 2, 1, 3)
    k = k.reshape(B, S, heads, d_k).transpose(0, 2, 1, 3)
    v = v.reshape(B, S, heads, d_k).transpose(0, 2, 1, 3)
    s = jnp.einsum("bhqd,bhkd->bhqk", q, k, precision=hp) / math.sqrt(2.0 * d_k)
    s = s + scores_pe
    p = jax.nn.softmax(s, axis=-1)
    o = jnp.einsum("bhqk,bhkd->bhqd", p, v, precision=hp)
    o = o.transpose(0, 2, 1, 3).reshape(B, S, D)
    attn = jnp.dot(o, params["wo"], precision=hp) + params["bo"]
    y = ln(attn + x, params["g1"], params["be1"])
    h1 = jnp.dot(y, params["w1"], precision=hp) + params["b1"]
    h1 = 0.5 * h1 * (1.0 + jax.lax.erf(h1 / math.sqrt(2.0)))
    ff = jnp.dot(h1, params["w2"], precision=hp) + params["b2"]
    return ln(ff + y, params["g2"], params["be2"])


def xavier_uniform(key, fan_in, fan_out):
    bound = math.sqrt(6.0 / (fan_in + fan_out))
    return jax.random.uniform(key, (fan_in, fan_out), jnp.float32, -bound, bound)


if __name__ == "__main__":
    # args: encoder_heads=4, enc_d_model=32, norm_eps=1e-5, enc_dropout=0.0, d_ff=64
    B, S, D, H, d_ff = 2, 8, 32, 4, 64
    eps = 1e-5

    key = jax.random.PRNGKey(0)
    keys = jax.random.split(key, 8)

    params = {
        # kernel uses (in, out) weight layout (= transpose of torch's (out, in));
        # xavier_uniform is symmetric in fan_in/fan_out so the init law matches.
        "wq": xavier_uniform(keys[0], D, D), "bq": jnp.zeros((1, D), jnp.float32),
        "wk": xavier_uniform(keys[1], D, D), "bk": jnp.zeros((1, D), jnp.float32),
        "wv": xavier_uniform(keys[2], D, D), "bv": jnp.zeros((1, D), jnp.float32),
        "wo": xavier_uniform(keys[3], D, D), "bo": jnp.zeros((1, D), jnp.float32),
        "g1": jnp.ones((1, D), jnp.float32), "be1": jnp.zeros((1, D), jnp.float32),
        "w1": xavier_uniform(keys[4], D, d_ff), "b1": jnp.zeros((1, d_ff), jnp.float32),
        "w2": xavier_uniform(keys[5], d_ff, D), "b2": jnp.zeros((1, D), jnp.float32),
        "g2": jnp.ones((1, D), jnp.float32), "be2": jnp.zeros((1, D), jnp.float32),
    }

    x = jax.random.normal(keys[6], (B, S, D), jnp.float32)
    scores_pe = 0.1 * jax.random.normal(keys[7], (B, H, S, S), jnp.float32)

    out = transformer_encoder_layer(x, scores_pe, params, heads=H, eps=eps)
    out = jax.block_until_ready(out)

    ref = reference_forward(x, scores_pe, params, heads=H, eps=eps)
    assert out.shape == (B, S, D)
    assert float(jnp.max(jnp.abs(out - ref))) < 1e-3, "mismatch vs pure-JAX reference"

    print("KERNEL_OK")
</pallas_src>

<mosaic_0001>
module attributes {stable_mosaic.version = 11 : i64} {
  func.func @encoder_layer_kernel(%arg0: i32, %arg1: memref<8x32xf32, #tpu.memory_space<vmem>>, %arg2: memref<1x4x8x8xf32, #tpu.memory_space<vmem>>, %arg3: memref<32x32xf32, #tpu.memory_space<vmem>>, %arg4: memref<1x32xf32, #tpu.memory_space<vmem>>, %arg5: memref<32x32xf32, #tpu.memory_space<vmem>>, %arg6: memref<1x32xf32, #tpu.memory_space<vmem>>, %arg7: memref<32x32xf32, #tpu.memory_space<vmem>>, %arg8: memref<1x32xf32, #tpu.memory_space<vmem>>, %arg9: memref<32x32xf32, #tpu.memory_space<vmem>>, %arg10: memref<1x32xf32, #tpu.memory_space<vmem>>, %arg11: memref<1x32xf32, #tpu.memory_space<vmem>>, %arg12: memref<1x32xf32, #tpu.memory_space<vmem>>, %arg13: memref<32x64xf32, #tpu.memory_space<vmem>>, %arg14: memref<1x64xf32, #tpu.memory_space<vmem>>, %arg15: memref<64x32xf32, #tpu.memory_space<vmem>>, %arg16: memref<1x32xf32, #tpu.memory_space<vmem>>, %arg17: memref<1x32xf32, #tpu.memory_space<vmem>>, %arg18: memref<1x32xf32, #tpu.memory_space<vmem>>, %arg19: memref<8x32xf32, #tpu.memory_space<vmem>>) attributes {dimension_semantics = [#tpu.dimension_semantics<parallel>], iteration_bounds = array<i64: 2>, scalar_prefetch = 0 : i64, scratch_operands = 0 : i64, tpu.core_type = #tpu.core_type<tc>, window_params = [{transform_indices = @transform_0, window_bounds = array<i64: 8, 32>}, {transform_indices = @transform_1, window_bounds = array<i64: 1, 4, 8, 8>}, {pipeline_mode = #tpu.pipeline_mode<synchronous>, transform_indices = @transform_2, window_bounds = array<i64: 32, 32>}, {pipeline_mode = #tpu.pipeline_mode<synchronous>, transform_indices = @transform_3, window_bounds = array<i64: 1, 32>}, {pipeline_mode = #tpu.pipeline_mode<synchronous>, transform_indices = @transform_4, window_bounds = array<i64: 32, 32>}, {pipeline_mode = #tpu.pipeline_mode<synchronous>, transform_indices = @transform_5, window_bounds = array<i64: 1, 32>}, {pipeline_mode = #tpu.pipeline_mode<synchronous>, transform_indices = @transform_6, window_bounds = array<i64: 32, 32>}, {pipeline_mode = #tpu.pipeline_mode<synchronous>, transform_indices = @transform_7, window_bounds = array<i64: 1, 32>}, {pipeline_mode = #tpu.pipeline_mode<synchronous>, transform_indices = @transform_8, window_bounds = array<i64: 32, 32>}, {pipeline_mode = #tpu.pipeline_mode<synchronous>, transform_indices = @transform_9, window_bounds = array<i64: 1, 32>}, {pipeline_mode = #tpu.pipeline_mode<synchronous>, transform_indices = @transform_10, window_bounds = array<i64: 1, 32>}, {pipeline_mode = #tpu.pipeline_mode<synchronous>, transform_indices = @transform_11, window_bounds = array<i64: 1, 32>}, {pipeline_mode = #tpu.pipeline_mode<synchronous>, transform_indices = @transform_12, window_bounds = array<i64: 32, 64>}, {pipeline_mode = #tpu.pipeline_mode<synchronous>, transform_indices = @transform_13, window_bounds = array<i64: 1, 64>}, {pipeline_mode = #tpu.pipeline_mode<synchronous>, transform_indices = @transform_14, window_bounds = array<i64: 64, 32>}, {pipeline_mode = #tpu.pipeline_mode<synchronous>, transform_indices = @transform_15, window_bounds = array<i64: 1, 32>}, {pipeline_mode = #tpu.pipeline_mode<synchronous>, transform_indices = @transform_16, window_bounds = array<i64: 1, 32>}, {pipeline_mode = #tpu.pipeline_mode<synchronous>, transform_indices = @transform_17, window_bounds = array<i64: 1, 32>}, {transform_indices = @transform_18, window_bounds = array<i64: 8, 32>}]} {
    %c0 = arith.constant 0 : index
    %c0_0 = arith.constant 0 : index
    %0 = vector.load %arg1[%c0, %c0_0] : memref<8x32xf32, #tpu.memory_space<vmem>>, vector<8x32xf32>
    %c0_1 = arith.constant 0 : index
    %c0_2 = arith.constant 0 : index
    %1 = vector.load %arg3[%c0_1, %c0_2] : memref<32x32xf32, #tpu.memory_space<vmem>>, vector<32x32xf32>
    %cst = arith.constant dense<0.000000e+00> : vector<8x32xf32>
    %2 = tpu.matmul %0, %1, %cst {dimension_numbers = #tpu.dot_dimension_numbers<[1], [0], [0], [1], [0, 0, 1, 1], [], []>} : vector<8x32xf32>, vector<32x32xf32>, vector<8x32xf32> -> vector<8x32xf32>
    %c0_3 = arith.constant 0 : index
    %c0_4 = arith.constant 0 : index
    %3 = vector.load %arg4[%c0_3, %c0_4] : memref<1x32xf32, #tpu.memory_space<vmem>>, vector<1x32xf32>
    %4 = vector.broadcast %3 : vector<1x32xf32> to vector<8x32xf32>
    %5 = arith.addf %2, %4 : vector<8x32xf32>
    %c0_5 = arith.constant 0 : index
    %c0_6 = arith.constant 0 : index
    %6 = vector.load %arg5[%c0_5, %c0_6] : memref<32x32xf32, #tpu.memory_space<vmem>>, vector<32x32xf32>
    %cst_7 = arith.constant dense<0.000000e+00> : vector<8x32xf32>
    %7 = tpu.matmul %0, %6, %cst_7 {dimension_numbers = #tpu.dot_dimension_numbers<[1], [0], [0], [1], [0, 0, 1, 1], [], []>} : vector<8x32xf32>, vector<32x32xf32>, vector<8x32xf32> -> vector<8x32xf32>
    %c0_8 = arith.constant 0 : index
    %c0_9 = arith.constant 0 : index
    %8 = vector.load %arg6[%c0_8, %c0_9] : memref<1x32xf32, #tpu.memory_space<vmem>>, vector<1x32xf32>
    %9 = vector.broadcast %8 : vector<1x32xf32> to vector<8x32xf32>
    %10 = arith.addf %7, %9 : vector<8x32xf32>
    %c0_10 = arith.constant 0 : index
    %c0_11 = arith.constant 0 : index
    %11 = vector.load %arg7[%c0_10, %c0_11] : memref<32x32xf32, #tpu.memory_space<vmem>>, vector<32x32xf32>
    %cst_12 = arith.constant dense<0.000000e+00> : vector<8x32xf32>
    %12 = tpu.matmul %0, %11, %cst_12 {dimension_numbers = #tpu.dot_dimension_numbers<[1], [0], [0], [1], [0, 0, 1, 1], [], []>} : vector<8x32xf32>, vector<32x32xf32>, vector<8x32xf32> -> vector<8x32xf32>
    %c0_13 = arith.constant 0 : index
    %c0_14 = arith.constant 0 : index
    %13 = vector.load %arg8[%c0_13, %c0_14] : memref<1x32xf32, #tpu.memory_space<vmem>>, vector<1x32xf32>
    %14 = vector.broadcast %13 : vector<1x32xf32> to vector<8x32xf32>
    %15 = arith.addf %12, %14 : vector<8x32xf32>
    %c0_15 = arith.constant 0 : index
    %c0_16 = arith.constant 0 : index
    %c0_17 = arith.constant 0 : index
    %c0_18 = arith.constant 0 : index
    %16 = vector.load %arg2[%c0_15, %c0_16, %c0_17, %c0_18] : memref<1x4x8x8xf32, #tpu.memory_space<vmem>>, vector<1x4x8x8xf32>
    %17 = vector.extract_strided_slice %5 {offsets = [0, 0], sizes = [8, 8], strides = [1, 1]} : vector<8x32xf32> to vector<8x8xf32>
    %18 = vector.shape_cast %17 : vector<8x8xf32> to vector<1x8x8xf32>
    %19 = vector.extract_strided_slice %10 {offsets = [0, 0], sizes = [8, 8], strides = [1, 1]} : vector<8x32xf32> to vector<8x8xf32>
    %20 = vector.shape_cast %19 : vector<8x8xf32> to vector<1x8x8xf32>
    %21 = vector.extract_strided_slice %15 {offsets = [0, 0], sizes = [8, 8], strides = [1, 1]} : vector<8x32xf32> to vector<8x8xf32>
    %22 = vector.shape_cast %21 : vector<8x8xf32> to vector<1x8x8xf32>
    "tpu.trace_start"() <{level = 10 : i32, message = "bqd,bkd->bqk"}> : () -> ()
    %cst_19 = arith.constant dense<0.000000e+00> : vector<1x8x8xf32>
    %23 = tpu.matmul %18, %20, %cst_19 {dimension_numbers = #tpu.dot_dimension_numbers<[2], [2], [1], [1], [0, 0, 0, 1, 1, 1], [0], [0]>} : vector<1x8x8xf32>, vector<1x8x8xf32>, vector<1x8x8xf32> -> vector<1x8x8xf32>
    "tpu.trace_stop"() : () -> ()
    %cst_20 = arith.constant 2.500000e-01 : f32
    %24 = vector.broadcast %cst_20 : f32 to vector<1x8x8xf32>
    %25 = arith.mulf %23, %24 : vector<1x8x8xf32>
    %26 = vector.extract_strided_slice %16 {offsets = [0, 0, 0, 0], sizes = [1, 1, 8, 8], strides = [1, 1, 1, 1]} : vector<1x4x8x8xf32> to vector<1x1x8x8xf32>
    %27 = vector.shape_cast %26 : vector<1x1x8x8xf32> to vector<1x8x8xf32>
    %28 = arith.addf %25, %27 : vector<1x8x8xf32>
    %cst_21 = arith.constant dense<0xFF800000> : vector<1x8xf32>
    %29 = vector.multi_reduction <maximumf>, %28, %cst_21 [2] : vector<1x8x8xf32> to vector<1x8xf32>
    %30 = vector.shape_cast %29 : vector<1x8xf32> to vector<1x8x1xf32>
    %31 = vector.broadcast %30 : vector<1x8x1xf32> to vector<1x8x8xf32>
    %32 = arith.subf %28, %31 : vector<1x8x8xf32>
    %33 = math.exp %32 : vector<1x8x8xf32>
    %cst_22 = arith.constant dense<0.000000e+00> : vector<1x8xf32>
    %34 = vector.multi_reduction <add>, %33, %cst_22 [2] : vector<1x8x8xf32> to vector<1x8xf32>
    %35 = vector.shape_cast %34 : vector<1x8xf32> to vector<1x8x1xf32>
    %36 = vector.broadcast %35 : vector<1x8x1xf32> to vector<1x8x8xf32>
    %37 = arith.divf %33, %36 : vector<1x8x8xf32>
    "tpu.trace_start"() <{level = 10 : i32, message = "bqk,bkd->bqd"}> : () -> ()
    %cst_23 = arith.constant dense<0.000000e+00> : vector<1x8x8xf32>
    %38 = tpu.matmul %37, %22, %cst_23 {dimension_numbers = #tpu.dot_dimension_numbers<[2], [1], [1], [2], [0, 0, 0, 1, 1, 2], [0], [0]>} : vector<1x8x8xf32>, vector<1x8x8xf32>, vector<1x8x8xf32> -> vector<1x8x8xf32>
    "tpu.trace_stop"() : () -> ()
    %39 = vector.shape_cast %38 : vector<1x8x8xf32> to vector<8x8xf32>
    %40 = vector.extract_strided_slice %5 {offsets = [0, 8], sizes = [8, 8], strides = [1, 1]} : vector<8x32xf32> to vector<8x8xf32>
    %41 = vector.shape_cast %40 : vector<8x8xf32> to vector<1x8x8xf32>
    %42 = vector.extract_strided_slice %10 {offsets = [0, 8], sizes = [8, 8], strides = [1, 1]} : vector<8x32xf32> to vector<8x8xf32>
    %43 = vector.shape_cast %42 : vector<8x8xf32> to vector<1x8x8xf32>
    %44 = vector.extract_strided_slice %15 {offsets = [0, 8], sizes = [8, 8], strides = [1, 1]} : vector<8x32xf32> to vector<8x8xf32>
    %45 = vector.shape_cast %44 : vector<8x8xf32> to vector<1x8x8xf32>
    "tpu.trace_start"() <{level = 10 : i32, message = "bqd,bkd->bqk"}> : () -> ()
    %cst_24 = arith.constant dense<0.000000e+00> : vector<1x8x8xf32>
    %46 = tpu.matmul %41, %43, %cst_24 {dimension_numbers = #tpu.dot_dimension_numbers<[2], [2], [1], [1], [0, 0, 0, 1, 1, 1], [0], [0]>} : vector<1x8x8xf32>, vector<1x8x8xf32>, vector<1x8x8xf32> -> vector<1x8x8xf32>
    "tpu.trace_stop"() : () -> ()
    %cst_25 = arith.constant 2.500000e-01 : f32
    %47 = vector.broadcast %cst_25 : f32 to vector<1x8x8xf32>
    %48 = arith.mulf %46, %47 : vector<1x8x8xf32>
    %49 = vector.extract_strided_slice %16 {offsets = [0, 1, 0, 0], sizes = [1, 1, 8, 8], strides = [1, 1, 1, 1]} : vector<1x4x8x8xf32> to vector<1x1x8x8xf32>
    %50 = vector.shape_cast %49 : vector<1x1x8x8xf32> to vector<1x8x8xf32>
    %51 = arith.addf %48, %50 : vector<1x8x8xf32>
    %cst_26 = arith.constant dense<0xFF800000> : vector<1x8xf32>
    %52 = vector.multi_reduction <maximumf>, %51, %cst_26 [2] : vector<1x8x8xf32> to vector<1x8xf32>
    %53 = vector.shape_cast %52 : vector<1x8xf32> to vector<1x8x1xf32>
    %54 = vector.broadcast %53 : vector<1x8x1xf32> to vector<1x8x8xf32>
    %55 = arith.subf %51, %54 : vector<1x8x8xf32>
    %56 = math.exp %55 : vector<1x8x8xf32>
    %cst_27 = arith.constant dense<0.000000e+00> : vector<1x8xf32>
    %57 = vector.multi_reduction <add>, %56, %cst_27 [2] : vector<1x8x8xf32> to vector<1x8xf32>
    %58 = vector.shape_cast %57 : vector<1x8xf32> to vector<1x8x1xf32>
    %59 = vector.broadcast %58 : vector<1x8x1xf32> to vector<1x8x8xf32>
    %60 = arith.divf %56, %59 : vector<1x8x8xf32>
    "tpu.trace_start"() <{level = 10 : i32, message = "bqk,bkd->bqd"}> : () -> ()
    %cst_28 = arith.constant dense<0.000000e+00> : vector<1x8x8xf32>
    %61 = tpu.matmul %60, %45, %cst_28 {dimension_numbers = #tpu.dot_dimension_numbers<[2], [1], [1], [2], [0, 0, 0, 1, 1, 2], [0], [0]>} : vector<1x8x8xf32>, vector<1x8x8xf32>, vector<1x8x8xf32> -> vector<1x8x8xf32>
    "tpu.trace_stop"() : () -> ()
    %62 = vector.shape_cast %61 : vector<1x8x8xf32> to vector<8x8xf32>
    %63 = vector.extract_strided_slice %5 {offsets = [0, 16], sizes = [8, 8], strides = [1, 1]} : vector<8x32xf32> to vector<8x8xf32>
    %64 = vector.shape_cast %63 : vector<8x8xf32> to vector<1x8x8xf32>
    %65 = vector.extract_strided_slice %10 {offsets = [0, 16], sizes = [8, 8], strides = [1, 1]} : vector<8x32xf32> to vector<8x8xf32>
    %66 = vector.shape_cast %65 : vector<8x8xf32> to vector<1x8x8xf32>
    %67 = vector.extract_strided_slice %15 {offsets = [0, 16], sizes = [8, 8], strides = [1, 1]} : vector<8x32xf32> to vector<8x8xf32>
    %68 = vector.shape_cast %67 : vector<8x8xf32> to vector<1x8x8xf32>
    "tpu.trace_start"() <{level = 10 : i32, message = "bqd,bkd->bqk"}> : () -> ()
    %cst_29 = arith.constant dense<0.000000e+00> : vector<1x8x8xf32>
    %69 = tpu.matmul %64, %66, %cst_29 {dimension_numbers = #tpu.dot_dimension_numbers<[2], [2], [1], [1], [0, 0, 0, 1, 1, 1], [0], [0]>} : vector<1x8x8xf32>, vector<1x8x8xf32>, vector<1x8x8xf32> -> vector<1x8x8xf32>
    "tpu.trace_stop"() : () -> ()
    %cst_30 = arith.constant 2.500000e-01 : f32
    %70 = vector.broadcast %cst_30 : f32 to vector<1x8x8xf32>
    %71 = arith.mulf %69, %70 : vector<1x8x8xf32>
    %72 = vector.extract_strided_slice %16 {offsets = [0, 2, 0, 0], sizes = [1, 1, 8, 8], strides = [1, 1, 1, 1]} : vector<1x4x8x8xf32> to vector<1x1x8x8xf32>
    %73 = vector.shape_cast %72 : vector<1x1x8x8xf32> to vector<1x8x8xf32>
    %74 = arith.addf %71, %73 : vector<1x8x8xf32>
    %cst_31 = arith.constant dense<0xFF800000> : vector<1x8xf32>
    %75 = vector.multi_reduction <maximumf>, %74, %cst_31 [2] : vector<1x8x8xf32> to vector<1x8xf32>
    %76 = vector.shape_cast %75 : vector<1x8xf32> to vector<1x8x1xf32>
    %77 = vector.broadcast %76 : vector<1x8x1xf32> to vector<1x8x8xf32>
    %78 = arith.subf %74, %77 : vector<1x8x8xf32>
    %79 = math.exp %78 : vector<1x8x8xf32>
    %cst_32 = arith.constant dense<0.000000e+00> : vector<1x8xf32>
    %80 = vector.multi_reduction <add>, %79, %cst_32 [2] : vector<1x8x8xf32> to vector<1x8xf32>
    %81 = vector.shape_cast %80 : vector<1x8xf32> to vector<1x8x1xf32>
    %82 = vector.broadcast %81 : vector<1x8x1xf32> to vector<1x8x8xf32>
    %83 = arith.divf %79, %82 : vector<1x8x8xf32>
    "tpu.trace_start"() <{level = 10 : i32, message = "bqk,bkd->bqd"}> : () -> ()
    %cst_33 = arith.constant dense<0.000000e+00> : vector<1x8x8xf32>
    %84 = tpu.matmul %83, %68, %cst_33 {dimension_numbers = #tpu.dot_dimension_numbers<[2], [1], [1], [2], [0, 0, 0, 1, 1, 2], [0], [0]>} : vector<1x8x8xf32>, vector<1x8x8xf32>, vector<1x8x8xf32> -> vector<1x8x8xf32>
    "tpu.trace_stop"() : () -> ()
    %85 = vector.shape_cast %84 : vector<1x8x8xf32> to vector<8x8xf32>
    %86 = vector.extract_strided_slice %5 {offsets = [0, 24], sizes = [8, 8], strides = [1, 1]} : vector<8x32xf32> to vector<8x8xf32>
    %87 = vector.shape_cast %86 : vector<8x8xf32> to vector<1x8x8xf32>
    %88 = vector.extract_strided_slice %10 {offsets = [0, 24], sizes = [8, 8], strides = [1, 1]} : vector<8x32xf32> to vector<8x8xf32>
    %89 = vector.shape_cast %88 : vector<8x8xf32> to vector<1x8x8xf32>
    %90 = vector.extract_strided_slice %15 {offsets = [0, 24], sizes = [8, 8], strides = [1, 1]} : vector<8x32xf32> to vector<8x8xf32>
    %91 = vector.shape_cast %90 : vector<8x8xf32> to vector<1x8x8xf32>
    "tpu.trace_start"() <{level = 10 : i32, message = "bqd,bkd->bqk"}> : () -> ()
    %cst_34 = arith.constant dense<0.000000e+00> : vector<1x8x8xf32>
    %92 = tpu.matmul %87, %89, %cst_34 {dimension_numbers = #tpu.dot_dimension_numbers<[2], [2], [1], [1], [0, 0, 0, 1, 1, 1], [0], [0]>} : vector<1x8x8xf32>, vector<1x8x8xf32>, vector<1x8x8xf32> -> vector<1x8x8xf32>
    "tpu.trace_stop"() : () -> ()
    %cst_35 = arith.constant 2.500000e-01 : f32
    %93 = vector.broadcast %cst_35 : f32 to vector<1x8x8xf32>
    %94 = arith.mulf %92, %93 : vector<1x8x8xf32>
    %95 = vector.extract_strided_slice %16 {offsets = [0, 3, 0, 0], sizes = [1, 1, 8, 8], strides = [1, 1, 1, 1]} : vector<1x4x8x8xf32> to vector<1x1x8x8xf32>
    %96 = vector.shape_cast %95 : vector<1x1x8x8xf32> to vector<1x8x8xf32>
    %97 = arith.addf %94, %96 : vector<1x8x8xf32>
    %cst_36 = arith.constant dense<0xFF800000> : vector<1x8xf32>
    %98 = vector.multi_reduction <maximumf>, %97, %cst_36 [2] : vector<1x8x8xf32> to vector<1x8xf32>
    %99 = vector.shape_cast %98 : vector<1x8xf32> to vector<1x8x1xf32>
    %100 = vector.broadcast %99 : vector<1x8x1xf32> to vector<1x8x8xf32>
    %101 = arith.subf %97, %100 : vector<1x8x8xf32>
    %102 = math.exp %101 : vector<1x8x8xf32>
    %cst_37 = arith.constant dense<0.000000e+00> : vector<1x8xf32>
    %103 = vector.multi_reduction <add>, %102, %cst_37 [2] : vector<1x8x8xf32> to vector<1x8xf32>
    %104 = vector.shape_cast %103 : vector<1x8xf32> to vector<1x8x1xf32>
    %105 = vector.broadcast %104 : vector<1x8x1xf32> to vector<1x8x8xf32>
    %106 = arith.divf %102, %105 : vector<1x8x8xf32>
    "tpu.trace_start"() <{level = 10 : i32, message = "bqk,bkd->bqd"}> : () -> ()
    %cst_38 = arith.constant dense<0.000000e+00> : vector<1x8x8xf32>
    %107 = tpu.matmul %106, %91, %cst_38 {dimension_numbers = #tpu.dot_dimension_numbers<[2], [1], [1], [2], [0, 0, 0, 1, 1, 2], [0], [0]>} : vector<1x8x8xf32>, vector<1x8x8xf32>, vector<1x8x8xf32> -> vector<1x8x8xf32>
    "tpu.trace_stop"() : () -> ()
    %108 = vector.shape_cast %107 : vector<1x8x8xf32> to vector<8x8xf32>
    %109 = tpu.concatenate %39, %62, %85, %108 in 1 : vector<8x8xf32>, vector<8x8xf32>, vector<8x8xf32>, vector<8x8xf32> -> vector<8x32xf32>
    %c0_39 = arith.constant 0 : index
    %c0_40 = arith.constant 0 : index
    %110 = vector.load %arg9[%c0_39, %c0_40] : memref<32x32xf32, #tpu.memory_space<vmem>>, vector<32x32xf32>
    %cst_41 = arith.constant dense<0.000000e+00> : vector<8x32xf32>
    %111 = tpu.matmul %109, %110, %cst_41 {dimension_numbers = #tpu.dot_dimension_numbers<[1], [0], [0], [1], [0, 0, 1, 1], [], []>} : vector<8x32xf32>, vector<32x32xf32>, vector<8x32xf32> -> vector<8x32xf32>
    %c0_42 = arith.constant 0 : index
    %c0_43 = arith.constant 0 : index
    %112 = vector.load %arg10[%c0_42, %c0_43] : memref<1x32xf32, #tpu.memory_space<vmem>>, vector<1x32xf32>
    %113 = vector.broadcast %112 : vector<1x32xf32> to vector<8x32xf32>
    %114 = arith.addf %111, %113 : vector<8x32xf32>
    %115 = arith.addf %114, %0 : vector<8x32xf32>
    %cst_44 = arith.constant dense<0.000000e+00> : vector<8xf32>
    %116 = vector.multi_reduction <add>, %115, %cst_44 [1] : vector<8x32xf32> to vector<8xf32>
    %117 = vector.shape_cast %116 : vector<8xf32> to vector<8x1xf32>
    %cst_45 = arith.constant 3.200000e+01 : f32
    %118 = vector.broadcast %cst_45 : f32 to vector<8x1xf32>
    %119 = arith.divf %117, %118 : vector<8x1xf32>
    %120 = vector.broadcast %119 : vector<8x1xf32> to vector<8x32xf32>
    %121 = arith.subf %115, %120 : vector<8x32xf32>
    %122 = arith.mulf %121, %121 : vector<8x32xf32>
    %cst_46 = arith.constant dense<0.000000e+00> : vector<8xf32>
    %123 = vector.multi_reduction <add>, %122, %cst_46 [1] : vector<8x32xf32> to vector<8xf32>
    %124 = vector.shape_cast %123 : vector<8xf32> to vector<8x1xf32>
    %cst_47 = arith.constant 3.200000e+01 : f32
    %125 = vector.broadcast %cst_47 : f32 to vector<8x1xf32>
    %126 = arith.divf %124, %125 : vector<8x1xf32>
    %cst_48 = arith.constant 9.99999974E-6 : f32
    %127 = vector.broadcast %cst_48 : f32 to vector<8x1xf32>
    %128 = arith.addf %126, %127 : vector<8x1xf32>
    %129 = math.rsqrt %128 : vector<8x1xf32>
    %130 = vector.broadcast %129 : vector<8x1xf32> to vector<8x32xf32>
    %131 = arith.mulf %121, %130 : vector<8x32xf32>
    %c0_49 = arith.constant 0 : index
    %c0_50 = arith.constant 0 : index
    %132 = vector.load %arg11[%c0_49, %c0_50] : memref<1x32xf32, #tpu.memory_space<vmem>>, vector<1x32xf32>
    %133 = vector.broadcast %132 : vector<1x32xf32> to vector<8x32xf32>
    %134 = arith.mulf %131, %133 : vector<8x32xf32>
    %c0_51 = arith.constant 0 : index
    %c0_52 = arith.constant 0 : index
    %135 = vector.load %arg12[%c0_51, %c0_52] : memref<1x32xf32, #tpu.memory_space<vmem>>, vector<1x32xf32>
    %136 = vector.broadcast %135 : vector<1x32xf32> to vector<8x32xf32>
    %137 = arith.addf %134, %136 : vector<8x32xf32>
    %c0_53 = arith.constant 0 : index
    %c0_54 = arith.constant 0 : index
    %138 = vector.load %arg13[%c0_53, %c0_54] : memref<32x64xf32, #tpu.memory_space<vmem>>, vector<32x64xf32>
    %cst_55 = arith.constant dense<0.000000e+00> : vector<8x64xf32>
    %139 = tpu.matmul %137, %138, %cst_55 {dimension_numbers = #tpu.dot_dimension_numbers<[1], [0], [0], [1], [0, 0, 1, 1], [], []>} : vector<8x32xf32>, vector<32x64xf32>, vector<8x64xf32> -> vector<8x64xf32>
    %c0_56 = arith.constant 0 : index
    %c0_57 = arith.constant 0 : index
    %140 = vector.load %arg14[%c0_56, %c0_57] : memref<1x64xf32, #tpu.memory_space<vmem>>, vector<1x64xf32>
    %141 = vector.broadcast %140 : vector<1x64xf32> to vector<8x64xf32>
    %142 = arith.addf %139, %141 : vector<8x64xf32>
    %cst_58 = arith.constant 5.000000e-01 : f32
    %143 = vector.broadcast %cst_58 : f32 to vector<8x64xf32>
    %144 = arith.mulf %143, %142 : vector<8x64xf32>
    %cst_59 = arith.constant 0.707106769 : f32
    %145 = vector.broadcast %cst_59 : f32 to vector<8x64xf32>
    %146 = arith.mulf %142, %145 : vector<8x64xf32>
    %147 = math.erf %146 : vector<8x64xf32>
    %cst_60 = arith.constant 1.000000e+00 : f32
    %148 = vector.broadcast %cst_60 : f32 to vector<8x64xf32>
    %149 = arith.addf %148, %147 : vector<8x64xf32>
    %150 = arith.mulf %144, %149 : vector<8x64xf32>
    %c0_61 = arith.constant 0 : index
    %c0_62 = arith.constant 0 : index
    %151 = vector.load %arg15[%c0_61, %c0_62] : memref<64x32xf32, #tpu.memory_space<vmem>>, vector<64x32xf32>
    %cst_63 = arith.constant dense<0.000000e+00> : vector<8x32xf32>
    %152 = tpu.matmul %150, %151, %cst_63 {dimension_numbers = #tpu.dot_dimension_numbers<[1], [0], [0], [1], [0, 0, 1, 1], [], []>} : vector<8x64xf32>, vector<64x32xf32>, vector<8x32xf32> -> vector<8x32xf32>
    %c0_64 = arith.constant 0 : index
    %c0_65 = arith.constant 0 : index
    %153 = vector.load %arg16[%c0_64, %c0_65] : memref<1x32xf32, #tpu.memory_space<vmem>>, vector<1x32xf32>
    %154 = vector.broadcast %153 : vector<1x32xf32> to vector<8x32xf32>
    %155 = arith.addf %152, %154 : vector<8x32xf32>
    %156 = arith.addf %155, %137 : vector<8x32xf32>
    %cst_66 = arith.constant dense<0.000000e+00> : vector<8xf32>
    %157 = vector.multi_reduction <add>, %156, %cst_66 [1] : vector<8x32xf32> to vector<8xf32>
    %158 = vector.shape_cast %157 : vector<8xf32> to vector<8x1xf32>
    %cst_67 = arith.constant 3.200000e+01 : f32
    %159 = vector.broadcast %cst_67 : f32 to vector<8x1xf32>
    %160 = arith.divf %158, %159 : vector<8x1xf32>
    %161 = vector.broadcast %160 : vector<8x1xf32> to vector<8x32xf32>
    %162 = arith.subf %156, %161 : vector<8x32xf32>
    %163 = arith.mulf %162, %162 : vector<8x32xf32>
    %cst_68 = arith.constant dense<0.000000e+00> : vector<8xf32>
    %164 = vector.multi_reduction <add>, %163, %cst_68 [1] : vector<8x32xf32> to vector<8xf32>
    %165 = vector.shape_cast %164 : vector<8xf32> to vector<8x1xf32>
    %cst_69 = arith.constant 3.200000e+01 : f32
    %166 = vector.broadcast %cst_69 : f32 to vector<8x1xf32>
    %167 = arith.divf %165, %166 : vector<8x1xf32>
    %cst_70 = arith.constant 9.99999974E-6 : f32
    %168 = vector.broadcast %cst_70 : f32 to vector<8x1xf32>
    %169 = arith.addf %167, %168 : vector<8x1xf32>
    %170 = math.rsqrt %169 : vector<8x1xf32>
    %171 = vector.broadcast %170 : vector<8x1xf32> to vector<8x32xf32>
    %172 = arith.mulf %162, %171 : vector<8x32xf32>
    %c0_71 = arith.constant 0 : index
    %c0_72 = arith.constant 0 : index
    %173 = vector.load %arg17[%c0_71, %c0_72] : memref<1x32xf32, #tpu.memory_space<vmem>>, vector<1x32xf32>
    %174 = vector.broadcast %173 : vector<1x32xf32> to vector<8x32xf32>
    %175 = arith.mulf %172, %174 : vector<8x32xf32>
    %c0_73 = arith.constant 0 : index
    %c0_74 = arith.constant 0 : index
    %176 = vector.load %arg18[%c0_73, %c0_74] : memref<1x32xf32, #tpu.memory_space<vmem>>, vector<1x32xf32>
    %177 = vector.broadcast %176 : vector<1x32xf32> to vector<8x32xf32>
    %178 = arith.addf %175, %177 : vector<8x32xf32>
    %c0_75 = arith.constant 0 : index
    %c0_76 = arith.constant 0 : index
    %179 = vector.load %arg19[%c0_75, %c0_76] : memref<8x32xf32, #tpu.memory_space<vmem>>, vector<8x32xf32>
    tpu.vector_store %arg19[%c0_75, %c0_76], %178 {strides = array<i32>} : memref<8x32xf32, #tpu.memory_space<vmem>>, vector<8x32xf32>,
    return
  }
  func.func @transform_0(%arg0: i32) -> (i32, i32) {
    %c0_i32 = arith.constant 0 : i32
    %c0_i32_0 = arith.constant 0 : i32
    return %arg0, %c0_i32 : i32, i32
  }
  func.func @transform_1(%arg0: i32) -> (i32, i32, i32, i32) {
    %c0_i32 = arith.constant 0 : i32
    %c0_i32_0 = arith.constant 0 : i32
    %c0_i32_1 = arith.constant 0 : i32
    %c0_i32_2 = arith.constant 0 : i32
    return %arg0, %c0_i32, %c0_i32_0, %c0_i32_1 : i32, i32, i32, i32
  }
  func.func @transform_2(%arg0: i32) -> (i32, i32) {
    %c0_i32 = arith.constant 0 : i32
    %c0_i32_0 = arith.constant 0 : i32
    %c0_i32_1 = arith.constant 0 : i32
    return %c0_i32, %c0_i32_0 : i32, i32
  }
  func.func @transform_3(%arg0: i32) -> (i32, i32) {
    %c0_i32 = arith.constant 0 : i32
    %c0_i32_0 = arith.constant 0 : i32
    %c0_i32_1 = arith.constant 0 : i32
    return %c0_i32, %c0_i32_0 : i32, i32
  }
  func.func @transform_4(%arg0: i32) -> (i32, i32) {
    %c0_i32 = arith.constant 0 : i32
    %c0_i32_0 = arith.constant 0 : i32
    %c0_i32_1 = arith.constant 0 : i32
    return %c0_i32, %c0_i32_0 : i32, i32
  }
  func.func @transform_5(%arg0: i32) -> (i32, i32) {
    %c0_i32 = arith.constant 0 : i32
    %c0_i32_0 = arith.constant 0 : i32
    %c0_i32_1 = arith.constant 0 : i32
    return %c0_i32, %c0_i32_0 : i32, i32
  }
  func.func @transform_6(%arg0: i32) -> (i32, i32) {
    %c0_i32 = arith.constant 0 : i32
    %c0_i32_0 = arith.constant 0 : i32
    %c0_i32_1 = arith.constant 0 : i32
    return %c0_i32, %c0_i32_0 : i32, i32
  }
  func.func @transform_7(%arg0: i32) -> (i32, i32) {
    %c0_i32 = arith.constant 0 : i32
    %c0_i32_0 = arith.constant 0 : i32
    %c0_i32_1 = arith.constant 0 : i32
    return %c0_i32, %c0_i32_0 : i32, i32
  }
  func.func @transform_8(%arg0: i32) -> (i32, i32) {
    %c0_i32 = arith.constant 0 : i32
    %c0_i32_0 = arith.constant 0 : i32
    %c0_i32_1 = arith.constant 0 : i32
    return %c0_i32, %c0_i32_0 : i32, i32
  }
  func.func @transform_9(%arg0: i32) -> (i32, i32) {
    %c0_i32 = arith.constant 0 : i32
    %c0_i32_0 = arith.constant 0 : i32
    %c0_i32_1 = arith.constant 0 : i32
    return %c0_i32, %c0_i32_0 : i32, i32
  }
  func.func @transform_10(%arg0: i32) -> (i32, i32) {
    %c0_i32 = arith.constant 0 : i32
    %c0_i32_0 = arith.constant 0 : i32
    %c0_i32_1 = arith.constant 0 : i32
    return %c0_i32, %c0_i32_0 : i32, i32
  }
  func.func @transform_11(%arg0: i32) -> (i32, i32) {
    %c0_i32 = arith.constant 0 : i32
    %c0_i32_0 = arith.constant 0 : i32
    %c0_i32_1 = arith.constant 0 : i32
    return %c0_i32, %c0_i32_0 : i32, i32
  }
  func.func @transform_12(%arg0: i32) -> (i32, i32) {
    %c0_i32 = arith.constant 0 : i32
    %c0_i32_0 = arith.constant 0 : i32
    %c0_i32_1 = arith.constant 0 : i32
    return %c0_i32, %c0_i32_0 : i32, i32
  }
  func.func @transform_13(%arg0: i32) -> (i32, i32) {
    %c0_i32 = arith.constant 0 : i32
    %c0_i32_0 = arith.constant 0 : i32
    %c0_i32_1 = arith.constant 0 : i32
    return %c0_i32, %c0_i32_0 : i32, i32
  }
  func.func @transform_14(%arg0: i32) -> (i32, i32) {
    %c0_i32 = arith.constant 0 : i32
    %c0_i32_0 = arith.constant 0 : i32
    %c0_i32_1 = arith.constant 0 : i32
    return %c0_i32, %c0_i32_0 : i32, i32
  }
  func.func @transform_15(%arg0: i32) -> (i32, i32) {
    %c0_i32 = arith.constant 0 : i32
    %c0_i32_0 = arith.constant 0 : i32
    %c0_i32_1 = arith.constant 0 : i32
    return %c0_i32, %c0_i32_0 : i32, i32
  }
  func.func @transform_16(%arg0: i32) -> (i32, i32) {
    %c0_i32 = arith.constant 0 : i32
    %c0_i32_0 = arith.constant 0 : i32
    %c0_i32_1 = arith.constant 0 : i32
    return %c0_i32, %c0_i32_0 : i32, i32
  }
  func.func @transform_17(%arg0: i32) -> (i32, i32) {
    %c0_i32 = arith.constant 0 : i32
    %c0_i32_0 = arith.constant 0 : i32
    %c0_i32_1 = arith.constant 0 : i32
    return %c0_i32, %c0_i32_0 : i32, i32
  }
  func.func @transform_18(%arg0: i32) -> (i32, i32) {
    %c0_i32 = arith.constant 0 : i32
    %c0_i32_0 = arith.constant 0 : i32
    return %arg0, %c0_i32 : i32, i32
  }
}

</mosaic_0001>

<bundles_post_ra>
// kernel: tpu_custom_call.1
= control target key start
LH: loop header
LB: loop body
LE: loop exit
PB: predicated region body
PF: predicated region fallthrough
CT: control target
= control target key end

     0   :  { %s3118_s0 = inlined_call_operand.hbm [shape: f32[16,32], index: 0, kind: input, shape index: {}]   ;;  %s3119_s1 = inlined_call_operand.vmem [shape: f32[2,4,8,8], index: 1, kind: input, shape index: {}]   ;;  %s3120_s2 = inlined_call_operand.vmem [shape: f32[32,32], index: 2, kind: input, shape index: {}]   ;;  %s3121_s3 = inlined_call_operand.vmem [shape: f32[1,32], index: 3, kind: input, shape index: {}]   ;;  %s3122_s4 = inlined_call_operand.hbm [shape: f32[32,32], index: 4, kind: input, shape index: {}]   ;;  %s3123_s5 = inlined_call_operand.vmem [shape: f32[1,32], index: 5, kind: input, shape index: {}]   ;;  %s3124_s6 = inlined_call_operand.hbm [shape: f32[32,32], index: 6, kind: input, shape index: {}]   ;;  %s3125_s7 = inlined_call_operand.vmem [shape: f32[1,32], index: 7, kind: input, shape index: {}]   ;;  %s3126_s8 = inlined_call_operand.hbm [shape: f32[32,32], index: 8, kind: input, shape index: {}]   ;;  %s3127_s9 = inlined_call_operand.vmem [shape: f32[1,32], index: 9, kind: input, shape index: {}]   ;;  %s3128_s10 = inlined_call_operand.vmem [shape: f32[1,32], index: 10, kind: input, shape index: {}]   ;;  %s3129_s11 = inlined_call_operand.vmem [shape: f32[1,32], index: 11, kind: input, shape index: {}]   ;;  %s3130_s12 = inlined_call_operand.hbm [shape: f32[32,64], index: 12, kind: input, shape index: {}]   ;;  %s3131_s13 = inlined_call_operand.vmem [shape: f32[1,64], index: 13, kind: input, shape index: {}]   ;;  %s3132_s14 = inlined_call_operand.vmem [shape: f32[64,32], index: 14, kind: input, shape index: {}]   ;;  %s3133_s15 = inlined_call_operand.vmem [shape: f32[1,32], index: 15, kind: input, shape index: {}]   ;;  %s3134_s16 = inlined_call_operand.vmem [shape: f32[1,32], index: 16, kind: input, shape index: {}]   ;;  %s3135_s17 = inlined_call_operand.vmem [shape: f32[1,32], index: 17, kind: input, shape index: {}]   ;;  %s3136_s18 = inlined_call_operand.hbm [shape: f32[16,32], index: 18, kind: output, shape index: {}]  }
   0x1   :  { %3150 = sst [smem:[#allocation22_spill]] %s3118_s0 }
   0x2   :  { %3151 = sst [smem:[#allocation23_spill]] %s3119_s1 }
   0x3   :  { %3152 = sst [smem:[#allocation24_spill]] %s3120_s2 }
   0x4   :  { %3153 = sst [smem:[#allocation25_spill]] %s3122_s4 }
   0x5   :  { %3154 = sst [smem:[#allocation26_spill]] %s3124_s6 }
   0x6   :  { %3155 = sst [smem:[#allocation27_spill]] %s3126_s8 }
   0x7   :  { %3156 = sst [smem:[#allocation28_spill]] %s3130_s12 }
   0x8   :  { %3157 = sst [smem:[#allocation29_spill]] %s3136_s18 }
   0x9   :  { %23 = vsyncpa [#allocation3], 0 }
   0xa   :  { %25 = vsyncpa [#allocation3 + $0x1], 0 }
   0xb   :  { %26 = vsyncpa [#allocation6], 0 }
   0xc   :  { %27 = vsyncpa [#allocation9], 0 }
   0xd   :  { %28 = vsyncpa [#allocation4], 0 }
   0xe   :  { %30 = vsyncpa [#allocation4 + $0x1], 0  ;;  %s2712_s27 = smov 0   ;;  %s2714_s28 = smov 0  }
   0xf   :  { %s2716_s29 = smov 0   ;;  %s2718_s30 = smov 0  }
  0x10 LB: > { %3158 = sst [smem:[#allocation16_spill]] %s2587_s27  ;;  %s2601_s0 = smov [#allocation5]   ;;  %s2599_s30 = sphi %s2718_s30, %s3191_s30   ;;  %s2595_s29 = sphi %s2716_s29, %s3193_s29   ;;  %s2591_s28 = sphi %s2714_s28, %s3195_s28   ;;  %s2587_s27 = sphi %s2712_s27, %s3194_s27  }
  0x11   : > { %3159 = sst [smem:[#allocation17_spill]] %s2595_s29  ;;  %s473_s19 = sshll.u32 %s2601_s0, 4  ;;  %s474_s19 = int_to_ptr.vmem [resolvable:$true] %s473_s19 }
  0x12   : > { %3160 = sst [smem:[#allocation18_spill]] %s2599_s30  ;;  %s2733_s1 = sadd.s32 4294967295, %s2599_s30  }
  0x13   : > { %p2062_p0 = scmp.ge.s32.totalorder %s2599_s30, 1  ;;  %p3144_p1 = scmp.eq.s32.totalorder %s2733_s1, 0 }
  0x14   : > { %p455_p2 = scmp.lt.s32.totalorder %s2599_s30, 3  ;;  %s2602_s21 = smov [#allocation8]  }
  0x15   : > { %s505_s22 = sshll.u32 %s2602_s21, 4  ;;  %s2603_s23 = smov [#allocation7]   ;;  %s2751_s22 = int_to_ptr.vmem [resolvable:$true] %s505_s22 }
  0x16   : > { %p2738_p3 = pnand %p2062_p0, %p455_p2  ;;  %s489_s24 = sshll.u32 %s2603_s23, 4  ;;  %s2753_s24 = int_to_ptr.vmem [resolvable:$true] %s489_s24 }
  0x17   : > { %s2406_s25 = scalar_lea.vmem %s474_s19, 512  ;;  %p2414_p11 = scmp.lt.s32.totalorder %s474_s19, %s474_s19 }
  0x18   : > { %s3161_s20 = scalar_select %p2738_p3, 1, 0 }
  0x19   : > { %p2296_p5 = pneg %p2738_p3  ;;  %p2407_p8 = scmp.ne.s32.totalorder %s474_s19, %s2406_s25 }
  0x1a   : > { %p2415_p12 = scmp.lt.s32.totalorder %s2406_s25, %s2406_s25 }
  0x1b   : > { %p2747_p6 = pnand %p2296_p5, %p3144_p1 }
  0x1c   : > { %p2416_p13 = por %p2415_p12, %p2414_p11 }
  0x1d   : > { %p2397_p7 = pneg %p2747_p6 }
  0x1f   : > { %p2409_p9 = pnand %p2407_p8, %p2397_p7 }
  0x21   : > { %p2410_p10 = pneg %p2409_p9 }
  0x23   : > { %p2417_p0 = pnand %p2416_p13, %p2410_p10 }
  0x25   : > { %2420 = shalt.err (!%p2417_p0)
}
  0x26   : > { %s2604_s26 = smov 128   ;;  %s2605_s0 = smov 8  }
  0x27   : > { %s3163_s4 = sld [smem:[#allocation25_spill]]  ;;  %s2432_s18 = scalar_lea.vmem %s2751_s22, 512 }
  0x28   : > { %p2433_p2 = scmp.ne.s32.totalorder %s2751_s22, %s2432_s18  ;;  %p2440_p9 = scmp.lt.s32.totalorder %s2751_s22, %s2751_s22 }
  0x29   : > { %p2441_p10 = scmp.lt.s32.totalorder %s2432_s18, %s2432_s18 }
  0x2a   : > { %p2435_p5 = pnand %p2433_p2, %p2397_p7 }
  0x2b   : > { %p2442_p11 = por %p2441_p10, %p2440_p9 }
  0x2c   : > { %p2436_p8 = pneg %p2435_p5 }
  0x2d   : > { %2299 = dma.hbm_to_vmem [thread:$0]  (!%p2747_p6), %s3163_s4, 512, %s474_s19, [#allocation6], %s2604_s26, %s2604_s26, %s2605_s0  }
  0x2e   : > { %p2443_p12 = pnand %p2442_p11, %p2436_p8 }
  0x30   : > { %2446 = shalt.err (!%p2443_p12)
}
  0x31   : > { %s3164_s8 = sld [smem:[#allocation27_spill]]  ;;  %s2458_s21 = scalar_lea.vmem %s2753_s24, 512 }
  0x32   : > { %p2459_p13 = scmp.ne.s32.totalorder %s2753_s24, %s2458_s21  ;;  %p2466_p5 = scmp.lt.s32.totalorder %s2753_s24, %s2753_s24 }
  0x33   : > { %p2467_p8 = scmp.lt.s32.totalorder %s2458_s21, %s2458_s21 }
  0x34   : > { %p2461_p0 = pnand %p2459_p13, %p2397_p7 }
  0x35   : > { %p2468_p9 = por %p2467_p8, %p2466_p5 }
  0x36   : > { %p2462_p2 = pneg %p2461_p0 }
  0x37   : > { %2305 = dma.hbm_to_vmem [thread:$0]  (!%p2747_p6), %s3164_s8, 512, %s2751_s22, [#allocation9], %s2604_s26, %s2604_s26, %s2605_s0  }
  0x38   : > { %p2469_p10 = pnand %p2468_p9, %p2462_p2 }
  0x3a   : > { %2472 = shalt.err (!%p2469_p10)
}
  0x3b   : > { %s3165_s6 = sld [smem:[#allocation26_spill]]  ;;  %s2606_s23 = smov [#allocation10]  }
  0x3c   : > { %s527_s25 = sshll.u32 %s2606_s23, 4  ;;  %s528_s25 = int_to_ptr.vmem [resolvable:$true] %s527_s25 }
  0x3d   : > { %s2484_s19 = scalar_lea.vmem %s528_s25, 512  ;;  %p2492_p0 = scmp.lt.s32.totalorder %s528_s25, %s528_s25 }
  0x3e   : > { %p2485_p11 = scmp.ne.s32.totalorder %s528_s25, %s2484_s19  ;;  %p2493_p2 = scmp.lt.s32.totalorder %s2484_s19, %s2484_s19 }
  0x40   : > { %p2487_p12 = pnand %p2485_p11, %p2397_p7  ;;  %p2494_p5 = por %p2493_p2, %p2492_p0 }
  0x41   : > { %2302 = dma.hbm_to_vmem [thread:$0]  (!%p2747_p6), %s3165_s6, 512, %s2753_s24, [#allocation6], %s2604_s26, %s2604_s26, %s2605_s0  }
  0x42   : > { %p2488_p13 = pneg %p2487_p12 }
  0x44   : > { %p2495_p8 = pnand %p2494_p5, %p2488_p13 }
  0x46   : > { %2498 = shalt.err (!%p2495_p8)
}
  0x47   : > { %s3166_s12 = sld [smem:[#allocation28_spill]]  ;;  %s2061_s2 = sadd.s32 4294967294, %s2599_s30  }
  0x48   : > { %s2813_s18 = sadd.s32 1, %s2599_s30   ;;  %s43_s23 = sadd.s32 1, %s2595_s29 }
  0x49   : > { %3167 = sst [smem:[#allocation19_spill]] %s2813_s18  ;;  %s40_s22 = ssub.s32 %s2599_s30, %s2813_s18 }
  0x4a   : > { %p41_p7 = scmp.eq.s32.totalorder %s40_s22, 0  ;;  %p50_p9 = scmp.ne.s32.totalorder %s2595_s29, %s2591_s28 }
  0x4b   : > { %p51_p10 = scmp.eq.s32.totalorder %s2599_s30, 0  ;;  %p56_p11 = scmp.ne.s32.totalorder %s2591_s28, %s2587_s27 }
  0x4c   : > { %s2824_s19 = scalar_select %p41_p7, %s2595_s29, %s43_s23  }
  0x4d   : > { %2308 = dma.hbm_to_vmem [thread:$0]  (!%p2747_p6), %s3166_s12, 512, %s528_s25, [#allocation9], %s2604_s26, %s2604_s26, %s2605_s0  }
  0x4e   : > { %3168 = sst [smem:[#allocation20_spill]] %s2824_s19  ;;  %p2826_p12 = por %p51_p10, %p50_p9 }
  0x4f   : > { %p2832_p6 = por %p3144_p1, %p56_p11  ;;  %p442_p13 = scmp.eq.s32.totalorder %s2733_s1, 1 }
  0x50   : > { %p448_p0 = scmp.eq.s32.totalorder %s2061_s2, 1  ;;  %p2321_p2 = scmp.lt.s32.totalorder %s2599_s30, 2 }
  0x51   : > { %s3170_s26 = scalar_select %p2832_p6, 1, 0 }
  0x52   : > { %s556_s0 = sand.u32 1, %s2595_s29   ;;  %p2839_p5 = por %p442_p13, %p50_p9 }
  0x53   : > { %p2843_p8 = por %p448_p0, %p56_p11  ;;  %s2068_s22 = sshll.u32 %s556_s0, 3 }
  0x54   : > { %s3171_s25 = scalar_select %p2839_p5, 1, 0 }
  0x55   : > { %s3172_s21 = scalar_select %p2843_p8, 1, 0 }
  0x56   : > { %s2069_s23 = sshll.u32 %s2599_s30, 7  ;;  %s3174_s8 = sld [smem:[#allocation22_spill]] }
  0x57   : > { %3173 = sst [smem:[#allocation21_spill]] %s3172_s21  ;;  %s560_s2 = scalar_lea.vmem [#allocation2], %s2068_s22 }
  0x58   : > { %s567_s19 = sshll.u32 %s560_s2, 4  ;;  %p2855_p7 = pnand %p2321_p2, %p2826_p12  ;;  %s568_s19 = int_to_ptr.vmem [resolvable:$true] %s567_s19 }
  0x59   : > { %s557_s18 = scalar_lea.sflag [#allocation3], %s556_s0 }
  0x5a   : > { %p2501_p10 = pneg %p2855_p7 }
  0x5c   : > { %s2851_s12 = scalar_lea.hbm %s3174_s8, %s2069_s23  ;;  %s2504_s23 = scalar_lea.hbm %s3174_s8, 256 }
  0x5d   : > { %s2499_s21 = scalar_lea.hbm %s2851_s12, 128  ;;  %p2505_p0 = scmp.lt.s32.totalorder %s2851_s12, %s3174_s8 }
  0x5e   : > { %p2500_p9 = scmp.ne.s32.totalorder %s2851_s12, %s2499_s21  ;;  %p2506_p12 = scmp.lt.s32.totalorder %s2504_s23, %s2499_s21 }
  0x60   : > { %p2502_p11 = pnand %p2501_p10, %p2500_p9  ;;  %p2507_p2 = por %p2506_p12, %p2505_p0 }
  0x62   : > { %p2503_p13 = pneg %p2502_p11 }
  0x64   : > { %p2508_p4 = pnand %p2507_p2, %p2503_p13 }
  0x66   : > { %2511 = shalt.err (!%p2508_p4)
}
  0x67   : > { %s2512_s24 = scalar_lea.vmem %s568_s19, 128  ;;  %s2607_s0 = smov [#allocation2]  }
  0x68   : > { %p2513_p1 = scmp.ne.s32.totalorder %s568_s19, %s2512_s24  ;;  %s2517_s30 = sshll.u32 %s2607_s0, 4  ;;  %s2518_s30 = int_to_ptr.vmem [resolvable:$false] %s2517_s30 }
  0x69   : > { %s2519_s27 = scalar_lea.vmem %s2518_s30, 256  ;;  %p2520_p9 = scmp.lt.s32.totalorder %s568_s19, %s2518_s30 }
  0x6a   : > { %p2515_p8 = pnand %p2513_p1, %p2501_p10  ;;  %p2521_p11 = scmp.lt.s32.totalorder %s2519_s27, %s2512_s24 }
  0x6c   : > { %p2516_p5 = pneg %p2515_p8  ;;  %p2522_p6 = por %p2521_p11, %p2520_p9 }
  0x6e   : > { %p2523_p3 = pnand %p2522_p6, %p2516_p5 }
  0x70   : > { %2526 = shalt.err (!%p2523_p3)
}
  0x71   : > { %2312 = dma.hbm_to_vmem [thread:$0]  (!%p2855_p7), %s2851_s12, 128, %s568_s19, %s557_s18  }
  0x72   : > { %p3176_p13 = scmp.ne.s32.totalorder %s3161_s20, 0 }
  0x73   : > { %s2876_s21 = sand.u32 (!%p3176_p13), 1, %s2591_s28   ;;  %p3177_p1 = scmp.ne.s32.totalorder (!%p3176_p13), %s3170_s26, 0 }
  0x74   : > { %584 = sbr.rel (%p3176_p13) target bundleno = 2529 (0x9e1), region = 92  ;;  %s2071_s4 = sshll.u32 (!%p3176_p13), %s2876_s21, 3 }
  0x75   : > { %s587_s30 = scalar_lea.sflag (!%p3176_p13), [#allocation3], %s2876_s21  ;;  %s590_s27 = scalar_lea.vmem (!%p3176_p13), [#allocation2], %s2071_s4 }
  0x79   : > { %2570 = dma.done.wait (%p3177_p1), %s587_s30, 128  }
  0x7a   : > { %2572 = vsyncadd (%p3177_p1), %s587_s30, 4294967168  ;;  %p3178_p3 = scmp.eq.s32.totalorder %s2733_s1, 0 }
  0x7c   : > { %2574 = dma.done.wait (%p3178_p3), [#allocation6], 1024   ;;  %p3179_p4 = pmov %p3178_p3 }
  0x7d   : > { %p3180_p6 = pmov %p3178_p3 }
  0x7e   : > { %2576 = vsyncadd (%p3179_p4), [#allocation6], 4294966272 }
  0x7f   : > { %2578 = dma.done.wait (%p3180_p6), [#allocation9], 1024   ;;  %p3181_p5 = pmov %p3178_p3 }
  0x80   : > { %v2608_v0 = vmov 0.0   ;;  %vm2609_vm0 = vmmov 0   ;;  %s3182_s20 = sld [smem:[#allocation24_spill]]  ;;  %v2914_v5 = vld [vmem:[%s590_s27] sm:$0xff]  ;;  %vm681_vm1 = vcmask 261120   ;;  %v756_v8 = vld [vmem:[#allocation5 + $0x8] sm:$0xff] }
  0x81   : > { %2580 = vsyncadd (%p3181_p5), [#allocation9], 4294966272  ;;  %2162 = vmatprep.subr.mxu1 %v2608_v0  ;;  %2170 = vmatprep.mubr.msk.f32.mxu1 %vm2609_vm0, %v2608_v0  ;;  %v758_v6 = vld [vmem:[#allocation5 + $0x18] sm:$0xff]  ;;  %v757_v7 = vld [vmem:[#allocation5 + $0x10] sm:$0xff]  ;;  %vm921_vm2 = vcmask 64512   ;;  %s2610_s27 = smov 112  }
  0x82   : > { %2184 = vmatprep.subr.mxu0 %v2608_v0  ;;  %2192 = vmatprep.mubr.msk.f32.mxu0 %vm2609_vm0, %v2608_v0  ;;  %v755_v9 = vld [vmem:[#allocation5] sm:$0xff]  ;;  %v839_v10 = vld [vmem:[#allocation7 + $0x18] sm:$0xff]  ;;  %v838_v11 = vld [vmem:[#allocation7 + $0x10] sm:$0xff]  ;;  %s2611_s12 = smov 120   ;;  %s2612_s29 = smov 104   ;;  %vm1599_vm3 = vcmask 130048  }
  0x83   : > { %2185 = vmatpush3.msra.mxu0 %v839_v10  ;;  %v837_v12 = vld [vmem:[#allocation7 + $0x8] sm:$0xff]  ;;  %v836_v13 = vld [vmem:[#allocation7] sm:$0xff]  ;;  %v2081_v16 = vld [vmem:[%s3123_s5] ss:$0 sm:$0xff]  ;;  %p664_p8 = scmp.lt.s32.totalorder %s2733_s1, 1  ;;  %s3183_s2 = sld [smem:[#allocation23_spill]] }
  0x84   : > { %2186 = vmatprep.subr.mxu0 %v2608_v0  ;;  %v2079_v19 = vld [vmem:[%s3121_s3] ss:$0 sm:$0xff]  ;;  %s2613_s0 = smov 8   ;;  %s2614_s30 = smov 16   ;;  %vm1601_vm4 = vcmask 195584   ;;  %vm1822_vm5 = vcmask 523264  }
  0x85   : > { %2187 = vmatpush3.msra.mxu0 %v838_v11  ;;  %v2083_v22 = vld [vmem:[%s3125_s7] ss:$0 sm:$0xff]  ;;  %s665_s26 = scalar_select %p664_p8, %s2733_s1, 1 }
  0x86   : > { %v673_v1 = vld [vmem:[%s3182_s20 + $0x18] sm:$0xff]  ;;  %v672_v2 = vld [vmem:[%s3182_s20 + $0x10] sm:$0xff]  ;;  %v671_v3 = vld [vmem:[%s3182_s20 + $0x8] sm:$0xff]  ;;  %2188 = vmatprep.subr.mxu0 %v2608_v0  ;;  %p3185_p10 = scmp.ne.s32.totalorder %s3171_s25, 0 }
  0x87   : > { %2163 = vmatpush3.msra.mxu1 %v673_v1  ;;  %v670_v4 = vld [vmem:[%s3182_s20] sm:$0xff]  ;;  %2189 = vmatpush3.msra.mxu0 %v837_v12  ;;  %s2111_s6 = sshll.u32 %s665_s26, 5  ;;  %s2108_s26 = sshll.u32 %s2733_s1, 7 }
  0x88   : > { %2164 = vmatprep.subr.mxu1 %v2608_v0  ;;  %2190 = vmatprep.subr.mxu0 %v2608_v0 }
  0x89   : > { %2165 = vmatpush3.msra.mxu1 %v672_v2  ;;  %2191 = vmatpush3.msra.mxu0 %v836_v13  ;;  %s668_s24 = scalar_lea.vmem %s3183_s2, %s2111_s6  ;;  %s663_s6 = scalar_lea.vmem [#allocation11], %s2071_s4 }
  0x8a   : > { %2166 = vmatprep.subr.mxu1 %v2608_v0  ;;  %2193 = vmatmul.mubr.msk.f32.vlgmr.msra.gmra.mxu0 %vm681_vm1, %v2914_v5  ;;  %v917_v33 = vld [vmem:[%s668_s24] sm:$0xff]  ;;  %v918_v39 = vld [vmem:[%s668_s24 + $0x8] sm:$0xff]  ;;  %v919_v44 = vld [vmem:[%s668_s24 + $0x10] sm:$0xff]  ;;  %s1941_s23 = sshll.u32 %s663_s6, 4  ;;  %s1942_s23 = int_to_ptr.vmem [resolvable:$true] %s1941_s23 }
  0x8b   : > { %2167 = vmatpush3.msra.mxu1 %v671_v3  ;;  %2205 = vmatprep.subr.mxu0 %v2608_v0  ;;  %v920_v50 = vld [vmem:[%s668_s24 + $0x18] sm:$0xff]  ;;  %s3184_s24 = sld [smem:[#allocation29_spill]] }
  0x8c   : > { %2168 = vmatprep.subr.mxu1 %v2608_v0  ;;  %2207 = vmatprep.mubr.msk.f32.mxu0 %vm2609_vm0, %v2608_v0 }
  0x8d   : > { %2169 = vmatpush3.msra.mxu1 %v670_v4 }
  0x8e   : > { %2171 = vmatmul.mubr.msk.f32.vlgmr.msra.gmra.mxu1 %vm681_vm1, %v2914_v5  ;;  %2173 = vmatprep.subr.mxu1 %v2608_v0 }
  0x8f   : > { %2174 = vmatpush3.msra.mxu1 %v758_v6  ;;  %2181 = vmatprep.mubr.msk.f32.mxu1 %vm2609_vm0, %v2608_v0 }
  0x90   : > { %2175 = vmatprep.subr.mxu1 %v2608_v0 }
  0x91   : > { %2176 = vmatpush3.msra.mxu1 %v757_v7 }
  0x92   : > { %2177 = vmatprep.subr.mxu1 %v2608_v0 }
  0x93   : > { %2178 = vmatpush3.msra.mxu1 %v756_v8 }
  0x94   : > { %2179 = vmatprep.subr.mxu1 %v2608_v0 }
  0x95   : > { %2180 = vmatpush3.msra.mxu1 %v755_v9 }
  0x96   : > { %2182 = vmatmul.mubr.msk.f32.vlgmr.msra.gmra.mxu1 %vm681_vm1, %v2914_v5  ;;  %2195 = vmatprep.subr.mxu1 %v2608_v0 }
  0x97   : > { %2197 = vmatprep.mubr.msk.f32.mxu1 %vm2609_vm0, %v2608_v0 }
 0x14a   : > { %v913_v23 = vpop.f32.mrf.mxu0 }
 0x14b   : > { %v2958_v24 = vadd.f32 %v2083_v22, %v913_v23 }
 0x14c   : > { %v2194_v25 = vpop.f32.mrf.mxu0 }
 0x14e   : > { %v751_v14 = vpop.f32.mrf.mxu1 }
 0x14f   : > { %v752_v21 = vadd.f32 %v2079_v19, %v751_v14 }
 0x150   : > { %v2172_v15 = vpop.f32.mrf.mxu1 }
 0x156   : > { %v832_v17 = vpop.f32.mrf.mxu1 }
 0x157   : > { %v833_v18 = vadd.f32 %v2081_v16, %v832_v17 }
 0x158   : > { %v2183_v20 = vpop.f32.mrf.mxu1 }
 0x159   : > { %1254 = vrot.lane.b32.xlu1 %v833_v18, %s2610_s27  ;;  %1086 = vrot.lane.b32.xlu0 %v833_v18, %s2611_s12 }
 0x15a   : > { %2196 = vmatpush3.xpose.msk.msra.mxu1 %vm921_vm2, %v833_v18 }
 0x15b   : > { %2200 = vmatprep.subr.mxu1 %v2608_v0 }
 0x15d   : > { %2198 = vmatmul.mubr.msk.f32.vlgmr.msra.gmra.mxu1 %vm921_vm2, %v752_v21  ;;  %1252 = vrot.lane.b32.xlu1 %v752_v21, %s2610_s27 }
 0x15e   : > { %1084 = vrot.lane.b32.xlu0 %v752_v21, %s2611_s12  ;;  %2202 = vmatprep.mubr.msk.f32.mxu1 %vm2609_vm0, %v2608_v0 }
 0x15f   : > { %2201 = vmatpush3.msra.mxu1 %v2958_v24 }
 0x160   : > { %2210 = vmatprep.subr.mxu1 %v2608_v0 }
 0x161   : > { %1419 = vrot.lane.b32.xlu1 %v752_v21, %s2612_s29 }
 0x162   : > { %1421 = vrot.lane.b32.xlu0 %v833_v18, %s2612_s29 }
 0x1cb   : > { %v1087_v26 = vpop.permute.xlu0 %1086  ;;  %v1255_v27 = vpop.permute.xlu1 %1254 }
 0x1cc   : > { %2206 = vmatpush3.xpose.msk.msra.mxu0 %vm921_vm2, %v1087_v26 }
 0x1cd   : > { %2215 = vmatprep.subr.mxu0 %v2608_v0 }
 0x1cf   : > { %v1253_v29 = vpop.permute.xlu1 %1252 }
 0x1d0   : > { %v1085_v28 = vpop.permute.xlu0 %1084 }
 0x1d1   : > { %2208 = vmatmul.mubr.msk.f32.vlgmr.msra.gmra.mxu0 %vm921_vm2, %v1085_v28 }
 0x1d2   : > { %2216 = vmatpush3.xpose.msk.msra.mxu0 %vm921_vm2, %v1255_v27  ;;  %2217 = vmatprep.mubr.msk.f32.mxu0 %vm2609_vm0, %v2608_v0 }
 0x1d3   : > { %2225 = vmatprep.subr.mxu0 %v2608_v0  ;;  %v1420_v31 = vpop.permute.xlu1 %1419 }
 0x1d4   : > { %v1422_v30 = vpop.permute.xlu0 %1421 }
 0x1d5   : > { %2218 = vmatmul.mubr.msk.f32.vlgmr.msra.gmra.mxu0 %vm921_vm2, %v1253_v29 }
 0x1d6   : > { %2226 = vmatpush3.xpose.msk.msra.mxu0 %vm921_vm2, %v1422_v30  ;;  %2227 = vmatprep.mubr.msk.f32.mxu0 %vm2609_vm0, %v2608_v0 }
 0x1d7   : > { %2235 = vmatprep.subr.mxu0 %v2608_v0 }
 0x1d9   : > { %2228 = vmatmul.mubr.msk.f32.vlgmr.msra.gmra.mxu0 %vm921_vm2, %v1420_v31  ;;  %v1606_v31 = vld [vmem:[#allocation8 + $0x18] sm:$0xff] }
 0x1da   : > { %2243 = vmatprep.mubr.msk.f32.mxu0 %vm2609_vm0, %v2608_v0  ;;  %2236 = vmatpush3.msra.mxu0 %v1606_v31 }
 0x1db   : > { %2237 = vmatprep.subr.mxu0 %v2608_v0 }
 0x21d   : > { %v994_v32 = vpop.f32.mrf.mxu1 }
 0x21e   : > { %v998_v34 = vmul.f32 0.25, %v994_v32  ;;  %v1605_v32 = vld [vmem:[#allocation8 + $0x10] sm:$0xff] }
 0x21f   : > { %v2199_v35 = vpop.f32.mrf.mxu1  ;;  %2238 = vmatpush3.msra.mxu0 %v1605_v32 }
 0x220   : > { %v999_v36 = vadd.f32 %v998_v34, %v917_v33  ;;  %v1604_v33 = vld [vmem:[#allocation8 + $0x8] sm:$0xff]  ;;  %2239 = vmatprep.subr.mxu0 %v2608_v0  ;;  %v1603_v34 = vld [vmem:[#allocation8] sm:$0xff] }
 0x221   : > { %2240 = vmatpush3.msra.mxu0 %v1604_v33 }
 0x222   : > { %v1000_v37 = vsel %vm921_vm2, %v999_v36, -inf  ;;  %2241 = vmatprep.subr.mxu0 %v2608_v0 }
 0x223   : > { %1001 = vmax.xlane.f32.xlu0 %v1000_v37  ;;  %2242 = vmatpush3.msra.mxu0 %v1603_v34 }
 0x224   : > { %2257 = vmatprep.subr.mxu0 %v2608_v0 }
 0x291   : > { %v1158_v38 = vpop.f32.mrf.mxu0 }
 0x292   : > { %v1162_v40 = vmul.f32 0.25, %v1158_v38 }
 0x293   : > { %v2209_v41 = vpop.f32.mrf.mxu0 }
 0x294   : > { %v1163_v42 = vadd.f32 %v1162_v40, %v918_v39 }
 0x295   : > { %v1326_v43 = vpop.f32.mrf.mxu0 }
 0x296   : > { %v1330_v45 = vmul.f32 0.25, %v1326_v43  ;;  %v1164_v46 = vsel %vm921_vm2, %v1163_v42, -inf }
 0x297   : > { %1165 = vmax.xlane.f32.xlu1 %v1164_v46  ;;  %v2219_v47 = vpop.f32.mrf.mxu0 }
 0x298   : > { %v1331_v48 = vadd.f32 %v1330_v45, %v919_v44  ;;  %v2097_v47 = vld [vmem:[%s3127_s9] ss:$0 sm:$0xff] }
 0x299   : > { %v1493_v49 = vpop.f32.mrf.mxu0 }
 0x29a   : > { %v1497_v51 = vmul.f32 0.25, %v1493_v49  ;;  %v1332_v52 = vsel %vm921_vm2, %v1331_v48, -inf }
 0x29b   : > { %v2229_v53 = vpop.f32.mrf.mxu0  ;;  %1333 = vmax.xlane.f32.xlu0 %v1332_v52 }
 0x29c   : > { %v1498_v54 = vadd.f32 %v1497_v51, %v920_v50 }
 0x29e   : > { %v1499_v55 = vsel %vm921_vm2, %v1498_v54, -inf }
 0x29f   : > { %1500 = vmax.xlane.f32.xlu0 %v1499_v55 }
 0x2a8   : > { %1176 = vrot.lane.b32.xlu1 %v2958_v24, %s2611_s12  ;;  %s2616_s12 = smov [#allocation11]  }
 0x2a9   : > { %s2531_s1 = sshll.u32 %s2616_s12, 4  ;;  %s2532_s1 = int_to_ptr.vmem [resolvable:$false] %s2531_s1 }
 0x2aa   : > { %s2533_s4 = scalar_lea.vmem %s2532_s1, 256  ;;  %p2534_p2 = scmp.lt.s32.totalorder %s1942_s23, %s2532_s1 }
 0x2ac   : > { %v1002_v56 = vpop.xlane.xlu0 %1001 }
 0x2ad   : > { %v1003_v57 = vsub.f32 %v999_v36, %v1002_v56 }
 0x2af   : > { %v1004_v58 = vmul.f32 1.442695, %v1003_v57 }
 0x2b1   : > { %2373 = vpow2.f32 %v1004_v58  ;;  %v1721_v58 = vld [vmem:[#allocation10 + $0x18] sm:$0xff] }
 0x2be   : > { %v2374_v59 = vpop.eup %2373 }
 0x2bf   : > { %v1006_v60 = vsel %vm921_vm2, %v2374_v59, 0.0 }
 0x2cc   : > { %1007 = vadd.xlane.f32.xlu1 %v1006_v60  ;;  %v1719_v60 = vld [vmem:[#allocation10 + $0x8] sm:$0xff] }
 0x320   : > { %v1166_v61 = vpop.xlane.xlu1 %1165 }
 0x321   : > { %v1167_v62 = vsub.f32 %v1163_v42, %v1166_v61 }
 0x323   : > { %v1168_v63 = vmul.f32 1.442695, %v1167_v62 }
 0x324   : > { %v1334_v1 = vpop.xlane.xlu0 %1333  ;;  %v1177_v14 = vpop.permute.xlu1 %1176 }
 0x325   : > { %2375 = vpow2.f32 %v1168_v63  ;;  %v1335_v2 = vsub.f32 %v1331_v48, %v1334_v1 }
 0x327   : > { %v1336_v3 = vmul.f32 1.442695, %v1335_v2  ;;  %v2099_v2 = vld [vmem:[%s3128_s10] ss:$0 sm:$0xff] }
 0x328   : > { %v1501_v4 = vpop.xlane.xlu0 %1500 }
 0x329   : > { %2377 = vpow2.f32 %v1336_v3  ;;  %v1502_v6 = vsub.f32 %v1498_v54, %v1501_v4  ;;  %v2100_v4 = vld [vmem:[%s3129_s11] ss:$0 sm:$0xff] }
 0x32b   : > { %v1503_v7 = vmul.f32 1.442695, %v1502_v6 }
 0x32d   : > { %2379 = vpow2.f32 %v1503_v7 }
 0x332   : > { %v2376_v8 = vpop.eup %2375 }
 0x333   : > { %v1170_v9 = vsel %vm921_vm2, %v2376_v8, 0.0 }
 0x334   : > { %1171 = vadd.xlane.f32.xlu0 %v1170_v9  ;;  %v1813_v9 = vld [vmem:[%s3132_s14 + $0x30] sm:$0xff] }
 0x336   : > { %v2378_v10 = vpop.eup %2377 }
 0x337   : > { %v1338_v11 = vsel %vm921_vm2, %v2378_v10, 0.0 }
 0x338   : > { %1339 = vadd.xlane.f32.xlu1 %v1338_v11  ;;  %v1811_v11 = vld [vmem:[%s3132_s14 + $0x20] sm:$0xff] }
 0x33a   : > { %v2380_v12 = vpop.eup %2379 }
 0x33b   : > { %v1505_v13 = vsel %vm921_vm2, %v2380_v12, 0.0 }
 0x33c   : > { %1506 = vadd.xlane.f32.xlu0 %v1505_v13  ;;  %v1809_v13 = vld [vmem:[%s3132_s14 + $0x10] sm:$0xff] }
 0x349   : > { %1510 = vrot.lane.b32.xlu1 %v2958_v24, %s2612_s29 }
 0x352   : > { %1343 = vrot.lane.b32.xlu0 %v2958_v24, %s2610_s27  ;;  %s2615_s27 = smov 24  }
 0x355   : > { %v1008_v15 = vpop.xlane.xlu1 %1007 }
 0x356   : > { %2381 = vrcp.f32 %v1008_v15  ;;  %v1807_v15 = vld [vmem:[%s3132_s14] sm:$0xff] }
 0x363   : > { %v2382_v16 = vpop.eup %2381 }
 0x364   : > { %v1010_v17 = vmul.f32 %v2382_v16, %v2374_v59  ;;  %v1720_v59 = vld [vmem:[#allocation10 + $0x10] sm:$0xff] }
 0x365   : > { %v2101_v16 = vld [vmem:[%s3131_s13] ss:$0 sm:$0xff] }
 0x366   : > { %2203 = vmatmul.mubr.msk.f32.vlgmr.msra.gmra.mxu1 %vm921_vm2, %v1010_v17 }
 0x367   : > { %2211 = vmatpush3.msra.mxu1 %v1177_v14  ;;  %2212 = vmatprep.mubr.msk.f32.mxu1 %vm2609_vm0, %v2608_v0  ;;  %v1808_v14 = vld [vmem:[%s3132_s14 + $0x8] sm:$0xff] }
 0x368   : > { %2220 = vmatprep.subr.mxu1 %v2608_v0 }
 0x3bd   : > { %v1172_v18 = vpop.xlane.xlu0 %1171 }
 0x3be   : > { %2383 = vrcp.f32 %v1172_v18 }
 0x3c1   : > { %v1340_v19 = vpop.xlane.xlu1 %1339 }
 0x3c2   : > { %2385 = vrcp.f32 %v1340_v19 }
 0x3c5   : > { %v1507_v20 = vpop.xlane.xlu0 %1506  ;;  %v1511_v26 = vpop.permute.xlu1 %1510 }
 0x3c6   : > { %2387 = vrcp.f32 %v1507_v20 }
 0x3c9   : > { %v1344_v23 = vpop.permute.xlu0 %1343 }
 0x3cb   : > { %v2384_v21 = vpop.eup %2383 }
 0x3cc   : > { %v1174_v22 = vmul.f32 %v2384_v21, %v2376_v8  ;;  %v1814_v8 = vld [vmem:[%s3132_s14 + $0x38] sm:$0xff] }
 0x3ce   : > { %2213 = vmatmul.mubr.msk.f32.vlgmr.msra.gmra.mxu1 %vm921_vm2, %v1174_v22 }
 0x3cf   : > { %v2386_v24 = vpop.eup %2385  ;;  %2221 = vmatpush3.msra.mxu1 %v1344_v23  ;;  %2222 = vmatprep.mubr.msk.f32.mxu1 %vm2609_vm0, %v2608_v0 }
 0x3d0   : > { %2230 = vmatprep.subr.mxu1 %v2608_v0  ;;  %v1342_v25 = vmul.f32 %v2386_v24, %v2378_v10  ;;  %v1812_v10 = vld [vmem:[%s3132_s14 + $0x28] sm:$0xff] }
 0x3d2   : > { %2223 = vmatmul.mubr.msk.f32.vlgmr.msra.gmra.mxu1 %vm921_vm2, %v1342_v25 }
 0x3d3   : > { %v2388_v27 = vpop.eup %2387  ;;  %2231 = vmatpush3.msra.mxu1 %v1511_v26  ;;  %2232 = vmatprep.mubr.msk.f32.mxu1 %vm2609_vm0, %v2608_v0 }
 0x3d4   : > { %v1509_v28 = vmul.f32 %v2388_v27, %v2380_v12  ;;  %2246 = vmatprep.subr.mxu1 %v2608_v0  ;;  %v1810_v12 = vld [vmem:[%s3132_s14 + $0x18] sm:$0xff] }
 0x3d6   : > { %2233 = vmatmul.mubr.msk.f32.vlgmr.msra.gmra.mxu1 %vm921_vm2, %v1509_v28 }
 0x3d7   : > { %2254 = vmatprep.mubr.msk.f32.mxu1 %vm2609_vm0, %v2608_v0  ;;  %2247 = vmatpush3.msra.mxu1 %v1721_v58 }
 0x3d8   : > { %2248 = vmatprep.subr.mxu1 %v2608_v0 }
 0x3d9   : > { %2249 = vmatpush3.msra.mxu1 %v1720_v59 }
 0x3da   : > { %2250 = vmatprep.subr.mxu1 %v2608_v0 }
 0x3db   : > { %2251 = vmatpush3.msra.mxu1 %v1719_v60 }
 0x3dc   : > { %2252 = vmatprep.subr.mxu1 %v2608_v0 }
 0x426   : > { %v1080_v29 = vpop.f32.mrf.mxu1 }
 0x428   : > { %v2204_v30 = vpop.f32.mrf.mxu1 }
 0x48e   : > { %v1248_v35 = vpop.f32.mrf.mxu1 }
 0x48f   : > { %1587 = vrot.lane.b32.xlu1 %v1248_v35, %s2613_s0  ;;  %s1939_s0 = scalar_lea.hbm %s3184_s24, %s2108_s26 }
 0x490   : > { %v2214_v36 = vpop.f32.mrf.mxu1 }
 0x492   : > { %v1415_v37 = vpop.f32.mrf.mxu1 }
 0x493   : > { %1591 = vrot.lane.b32.xlu0 %v1415_v37, %s2614_s30  ;;  %s1928_s30 = scalar_lea.sflag [#allocation4], %s2876_s21 }
 0x494   : > { %v2224_v38 = vpop.f32.mrf.mxu1 }
 0x496   : > { %v1582_v39 = vpop.f32.mrf.mxu1 }
 0x497   : > { %1595 = vrot.lane.b32.xlu1 %v1582_v39, %s2615_s27  ;;  %v2105_v39 = vld [vmem:[%s3134_s16] ss:$0 sm:$0xff]  ;;  %s2527_s27 = scalar_lea.vmem %s1942_s23, 128 }
 0x498   : > { %v2234_v40 = vpop.f32.mrf.mxu1  ;;  %p2528_p7 = scmp.ne.s32.totalorder %s1942_s23, %s2527_s27  ;;  %p2535_p9 = scmp.lt.s32.totalorder %s2533_s4, %s2527_s27 }
 0x49a   : > { %p2529_p0 = pnand %p2528_p7, %p3185_p10  ;;  %p2536_p11 = por %p2535_p9, %p2534_p2 }
 0x49c   : > { %p2530_p12 = pneg %p2529_p0 }
 0x49e   : > { %p2537_p13 = pnand %p2536_p11, %p2530_p12 }
 0x501   : > { %v1588_v41 = vpop.permute.xlu1 %1587 }
 0x502   : > { %v1598_v43 = vsel %vm921_vm2, %v1080_v29, %v1588_v41  ;;  %v2106_v41 = vld [vmem:[%s3135_s17] ss:$0 sm:$0xff] }
 0x505   : > { %v1592_v42 = vpop.permute.xlu0 %1591 }
 0x506   : > { %v1600_v44 = vsel %vm1599_vm3, %v1598_v43, %v1592_v42 }
 0x509   : > { %v1596_v45 = vpop.permute.xlu1 %1595 }
 0x50a   : > { %v1602_v46 = vsel %vm1601_vm4, %v1600_v44, %v1596_v45 }
 0x50b   : > { %2244 = vmatmul.mubr.msk.f32.vlgmr.msra.gmra.mxu0 %vm681_vm1, %v1602_v46 }
 0x50c   : > { %2273 = vmatprep.mubr.msk.f32.mxu0 %vm2609_vm0, %v2608_v0  ;;  %2258 = vmatpush3.msra.mxu0 %v1814_v8 }
 0x50d   : > { %2259 = vmatprep.subr.mxu0 %v2608_v0 }
 0x50e   : > { %2260 = vmatpush3.msra.mxu0 %v1813_v9 }
 0x50f   : > { %2261 = vmatprep.subr.mxu0 %v2608_v0 }
 0x510   : > { %2262 = vmatpush3.msra.mxu0 %v1812_v10 }
 0x511   : > { %2263 = vmatprep.subr.mxu0 %v2608_v0 }
 0x512   : > { %2264 = vmatpush3.msra.mxu0 %v1811_v11 }
 0x513   : > { %2265 = vmatprep.subr.mxu0 %v2608_v0 }
 0x514   : > { %2266 = vmatpush3.msra.mxu0 %v1810_v12 }
 0x515   : > { %2267 = vmatprep.subr.mxu0 %v2608_v0 }
 0x516   : > { %2268 = vmatpush3.msra.mxu0 %v1809_v13 }
 0x517   : > { %2269 = vmatprep.subr.mxu0 %v2608_v0 }
 0x518   : > { %2270 = vmatpush3.msra.mxu0 %v1808_v14 }
 0x519   : > { %2271 = vmatprep.subr.mxu0 %v2608_v0  ;;  %v2103_v0 = vld [vmem:[%s3133_s15] ss:$0 sm:$0xff] }
 0x51a   : > { %2272 = vmatpush3.msra.mxu0 %v1807_v15 }
 0x5cb   : > { %v1683_v48 = vpop.f32.mrf.mxu0 }
 0x5cc   : > { %v1684_v49 = vadd.f32 %v2097_v47, %v1683_v48 }
 0x5cd   : > { %v2245_v50 = vpop.f32.mrf.mxu0 }
 0x5ce   : > { %v1687_v51 = vadd.f32 %v1684_v49, %v2914_v5  ;;  %v1718_v5 = vld [vmem:[#allocation10] sm:$0xff] }
 0x5cf   : > { %2253 = vmatpush3.msra.mxu1 %v1718_v5 }
 0x5d0   : > { %v1688_v52 = vsel %vm681_vm1, %v1687_v51, 0.0 }
 0x5d1   : > { %1689 = vadd.xlane.f32.xlu0 %v1688_v52 }
 0x65a   : > { %v1690_v53 = vpop.xlane.xlu0 %1689 }
 0x65b   : > { %v1692_v54 = vmul.f32 0.03125, %v1690_v53 }
 0x65d   : > { %v1693_v55 = vsub.f32 %v1687_v51, %v1692_v54 }
 0x65f   : > { %v1694_v56 = vmul.f32 %v1693_v55, %v1693_v55 }
 0x661   : > { %v1695_v57 = vsel %vm681_vm1, %v1694_v56, 0.0 }
 0x662   : > { %1696 = vadd.xlane.f32.xlu1 %v1695_v57 }
 0x6eb   : > { %v1697_v61 = vpop.xlane.xlu1 %1696 }
 0x6ec   : > { %v1698_v62 = vmul.f32 0.03125, %v1697_v61 }
 0x6ee   : > { %v1699_v63 = vadd.f32 1e-05, %v1698_v62 }
 0x6f0   : > { %2389 = vrsqrt.f32 %v1699_v63 }
 0x6fd   : > { %v2390_v1 = vpop.eup %2389 }
 0x6fe   : > { %v1701_v3 = vmul.f32 %v2390_v1, %v1693_v55 }
 0x700   : > { %v1709_v6 = vmul.f32 %v2099_v2, %v1701_v3 }
 0x702   : > { %v1717_v7 = vadd.f32 %v2100_v4, %v1709_v6 }
 0x704   : > { %2255 = vmatmul.mubr.msk.f32.vlgmr.msra.gmra.mxu1 %vm681_vm1, %v1717_v7 }
 0x7c4   : > { %v1798_v17 = vpop.f32.mrf.mxu1 }
 0x7c5   : > { %v1799_v18 = vadd.f32 %v2101_v16, %v1798_v17 }
 0x7c6   : > { %v2256_v19 = vpop.f32.mrf.mxu1 }
 0x7c7   : > { %v1803_v20 = vmul.f32 0.70710677, %v1799_v18  ;;  %v1802_v22 = vmul.f32 0.5, %v1799_v18 }
 0x7c9   : > { %2391 = verf.f32 %v1803_v20 }
 0x7d6   : > { %v2392_v21 = vpop.eup %2391 }
 0x7d7   : > { %v1805_v23 = vadd.f32 1.0, %v2392_v21 }
 0x7d9   : > { %v1806_v24 = vmul.f32 %v1805_v23, %v1802_v22 }
 0x7db   : > { %2274 = vmatmul.mubr.msk.f32.vlgmr.msra.gmra.mxu0 %vm1822_vm5, %v1806_v24 }
 0x89b   : > { %v1892_v25 = vpop.f32.mrf.mxu0 }
 0x89c   : > { %v1893_v26 = vadd.f32 %v2103_v0, %v1892_v25 }
 0x89d   : > { %v2275_v27 = vpop.f32.mrf.mxu0 }
 0x89e   : > { %v1896_v28 = vadd.f32 %v1893_v26, %v1717_v7 }
 0x8a0   : > { %v1897_v29 = vsel %vm681_vm1, %v1896_v28, 0.0 }
 0x8a1   : > { %1898 = vadd.xlane.f32.xlu0 %v1897_v29 }
 0x92a   : > { %v1899_v30 = vpop.xlane.xlu0 %1898 }
 0x92b   : > { %v1900_v31 = vmul.f32 0.03125, %v1899_v30 }
 0x92d   : > { %v1901_v32 = vsub.f32 %v1896_v28, %v1900_v31 }
 0x92f   : > { %v1902_v33 = vmul.f32 %v1901_v32, %v1901_v32 }
 0x931   : > { %v1903_v34 = vsel %vm681_vm1, %v1902_v33, 0.0 }
 0x932   : > { %1904 = vadd.xlane.f32.xlu0 %v1903_v34 }
 0x9bb   : > { %v1905_v35 = vpop.xlane.xlu0 %1904 }
 0x9bc   : > { %v1906_v36 = vmul.f32 0.03125, %v1905_v35 }
 0x9be   : > { %v1907_v37 = vadd.f32 1e-05, %v1906_v36 }
 0x9c0   : > { %2393 = vrsqrt.f32 %v1907_v37 }
 0x9cd   : > { %v2394_v38 = vpop.eup %2393 }
 0x9ce   : > { %v1909_v40 = vmul.f32 %v2394_v38, %v1901_v32 }
 0x9d0   : > { %v1917_v42 = vmul.f32 %v2105_v39, %v1909_v40 }
 0x9d2   : > { %v1925_v43 = vadd.f32 %v2106_v41, %v1917_v42 }
 0x9d4   : > { %1926 = vst.msk [vmem:[%s663_s6] sm:$0xff] %vm681_vm1, %v1925_v43 }
 0x9d5   : > { %2540 = shalt.err (!%p2537_p13)
}
 0x9d6   : > { %s2541_s29 = scalar_lea.hbm %s1939_s0, 128  ;;  %s2545_s19 = scalar_lea.hbm %s3184_s24, 256 }
 0x9d7   : > { %p2542_p1 = scmp.ne.s32.totalorder %s1939_s0, %s2541_s29  ;;  %p2546_p6 = scmp.lt.s32.totalorder %s1939_s0, %s3184_s24 }
 0x9d8   : > { %p2547_p5 = scmp.lt.s32.totalorder %s2545_s19, %s2541_s29 }
 0x9d9   : > { %p2543_p3 = pnand %p2542_p1, %p3185_p10 }
 0x9da   : > { %p2548_p8 = por %p2547_p5, %p2546_p6 }
 0x9db   : > { %p2544_p4 = pneg %p2543_p3 }
 0x9dd   : > { %p2549_p7 = pnand %p2548_p8, %p2544_p4 }
 0x9df   : > { %2552 = shalt.err (!%p2549_p7)
}
 0x9e0   : > { %2294 = dma.vmem_to_hbm [thread:$0]  (%p3185_p10), %s1942_s23, 128, %s1939_s0, %s1928_s30  }
 0x9e1 PF: > { %s3186_s22 = sld [smem:[#allocation16_spill]] }
 0x9e2   : > { %s3187_s2 = sld [smem:[#allocation21_spill]] }
 0x9e3   : > { %s3188_s27 = sld [smem:[#allocation18_spill]] }
 0x9e7   : > { %s1953_s12 = sand.u32 1, %s3186_s22  }
 0x9e8   : > { %p3189_p0 = scmp.ne.s32.totalorder %s3187_s2, 0  ;;  %s1954_s1 = scalar_lea.sflag [#allocation4], %s1953_s12 }
 0x9e9   : > { %p3190_p12 = scmp.ge.s32.totalorder %s3188_s27, 2 }
 0x9eb   : > { %p2314_p2 = pnand %p3190_p12, %p3189_p0 }
 0x9ed   : > { %p2315_p9 = pneg %p2314_p2 }
 0x9ef   : > { %2582 = dma.done.wait (%p2315_p9), %s1954_s1, 128  }
 0x9f0   : > { %2584 = vsyncadd (%p2315_p9), %s1954_s1, 4294967168  ;;  %s3191_s30 = sld [smem:[#allocation19_spill]]  ;;  %s3194_s27 = smov %s2591_s28 }
 0x9f1   : > { %s3192_s4 = sld [smem:[#allocation17_spill]] }
 0x9f2   : > { %s3193_s29 = sld [smem:[#allocation20_spill]] }
 0x9f6   : > { %p33_p11 = scmp.ge.s32.totalorder %s3191_s30, 4  }
 0x9f7   : > { %s3195_s28 = smov %s3192_s4 }
 0x9f8   :  { %35 = sbr.rel (!%p33_p11) target bundleno = 16 (0x10), region = 156 }
 0x9fd   :  { %1959 = vsyncpa [#allocation3], 1 }
 0x9fe   :  { %1961 = vsyncpa [#allocation3 + $0x1], 1 }
 0x9ff   :  { %1962 = vsyncpa [#allocation6], 1 }
 0xa00   :  { %1963 = vsyncpa [#allocation9], 1 }
 0xa01   :  { %1964 = vsyncpa [#allocation4], 1 }
 0xa02   :  { %1966 = vsyncpa [#allocation4 + $0x1], 1 }

</bundles_post_ra>
